<compile_context>
chip_gen: v5e
topology: v5e:2x2
jax: 0.10.0
libtpu: 0.0.40
codegen_flags: <defaults>
</compile_context>

<pallas_src>
import math

import jax
import jax.numpy as jnp
from jax.experimental import pallas as pl
from jax.experimental.pallas import tpu as pltpu

# ----------------------------- config ---------------------------------------
B = 2           # batch
L = 16          # len_enc
D = 32          # d_model
DFF = 64        # d_ff
H = 4           # n_heads of the injected nn.MultiheadAttention
HD = D // H     # head dim
LEN_WINDOW = 5  # series-decomposition window (odd -> output length == L)
BL = B * L      # fused token rows
LANES = 128
OUT_ROWS = (BL * D) // LANES        # 8  (lane-dense output rows)
ROW_GROUPS = BL // OUT_ROWS         # 4  (tokens folded into each 128-lane row)

_SCALE = 1.0 / math.sqrt(HD)
_INV_SQRT2 = 1.0 / math.sqrt(2.0)
_NEG_INF = -1e30


# ----------------------------- kernel ---------------------------------------
def encoder_layer_kernel(x_ref, p_ref, out_ref):
    # ---- unpack the lane-dense parameter slab (static VMEM slices) ----------
    wqkv = p_ref[0:32, 0:96]          # (D, 3D)   in_proj weight (transposed)
    wo   = p_ref[0:32, 96:128]        # (D, D)    out_proj weight (transposed)
    w1t  = p_ref[32:64, 0:64]         # (D, DFF)  conv1 (k=1) weight, transposed
    ima  = p_ref[32:64, 64:96]        # (BL, BL)  I - blockdiag(avgpool)  (decomp1)
    pima = p_ref[32:64, 96:128]       # (BL, BL)  row-permuted (I - avg)  (decomp2 + relayout)
    w2t  = p_ref[64:128, 0:32]        # (DFF, D)  conv2 (k=1) weight, transposed
    bqkv = p_ref[64:65, 32:128]       # (1, 3D)   in_proj bias
    bo   = p_ref[72:73, 32:64]        # (1, D)    out_proj bias
    mask = p_ref[96:128, 32:64]       # (BL, BL)  0 same-batch, -1e30 cross-batch

    x = x_ref[...].astype(jnp.float32)                                    # (BL, D)

    # ---- QKV projection on the fused (B*L, D) slab ---------------------------
    qkv = jnp.dot(x, wqkv, preferred_element_type=jnp.float32) + bqkv     # (BL, 3D)

    # ---- per-head attention on the full 32-row slab (block-diag masked) ------
    attn = jnp.zeros((BL, D), jnp.float32)
    for h in range(H):                                    # static unroll (H=4)
        q = qkv[:, h * HD:(h + 1) * HD] * _SCALE                          # (BL, HD)
        k = qkv[:, D + h * HD:D + (h + 1) * HD]                           # (BL, HD)
        v = qkv[:, 2 * D + h * HD:2 * D + (h + 1) * HD]                   # (BL, HD)
        # scores without materializing k.T
        s = jax.lax.dot_general(q, k, (((1,), (1,)), ((), ())),
                                preferred_element_type=jnp.float32)       # (BL, BL)
        s = s + mask                    # cross-batch entries -> -1e30 -> exp() == 0
        s = s - jnp.max(s, axis=-1, keepdims=True)
        p = jnp.exp(s)
        p = p * pl.reciprocal(jnp.sum(p, axis=-1, keepdims=True), approx=True)
        o_h = jnp.dot(p, v, preferred_element_type=jnp.float32)           # (BL, HD)
        # fold the output projection into the head loop (register accumulation)
        attn = attn + jnp.dot(o_h, wo[h * HD:(h + 1) * HD, :],
                              preferred_element_type=jnp.float32)         # (BL, D)
    attn = attn + bo

    # ---- residual + decomp1 (keep seasonal part): y = (I - avg) @ (x + attn) -
    y = jnp.dot(ima, x + attn, preferred_element_type=jnp.float32)        # (BL, D)

    # ---- FFN: conv1(k=1, no bias) -> exact-erf GELU -> conv2(k=1, no bias) ---
    h1 = jnp.dot(y, w1t, preferred_element_type=jnp.float32)              # (BL, DFF)
    h1 = 0.5 * h1 * (1.0 + jax.lax.erf(h1 * _INV_SQRT2))   # F.gelu (exact erf)
    h2 = jnp.dot(h1, w2t, preferred_element_type=jnp.float32)             # (BL, D)

    # ---- residual + decomp2, fused with the lane-dense output relayout -------
    # pima[8*j + i, :] = (I - avg)[4*i + j, :], so piece j row i equals
    # z[4*i + j, :]; concatenating the 4 pieces along lanes is exactly the
    # row-major (8, 128) flattening of the (BL, D) result.
    w = y + h2
    pieces = [jnp.dot(pima[OUT_ROWS * j:OUT_ROWS * (j + 1), :], w,
                      preferred_element_type=jnp.float32)
              for j in range(ROW_GROUPS)]                                 # 4 x (8, D)
    out_ref[...] = jnp.concatenate(pieces, axis=1).astype(out_ref.dtype)  # (8, 128)


# ----------------------------- host-side packing ------------------------------
def build_avgpool_matrix(length, k):
    """(L, L) matrix reproducing AvgPool1d(k, stride=1, padding=(k-1)//2,
    count_include_pad=False) applied along the sequence axis."""
    p = (k - 1) // 2
    t = jnp.arange(length)[:, None]       # output position
    s = jnp.arange(length)[None, :]       # input position
    in_window = (s >= t - p) & (s <= t - p + k - 1)
    count = jnp.sum(in_window, axis=1, keepdims=True)
    return in_window.astype(jnp.float32) / count.astype(jnp.float32)


def pack_params(wqkv, bqkv, wo, bo, w1t, w2t, avg_mat):
    """Pack every parameter into one lane-dense (128, 128) f32 slab (one DMA).
    Built once at init; the kernel unpacks it with static slices."""
    avg_full = jnp.kron(jnp.eye(B, dtype=jnp.float32), avg_mat)   # block-diag (BL, BL)
    ima = jnp.eye(BL, dtype=jnp.float32) - avg_full               # seasonal = (I - A) x
    # Row permutation folding the (BL, D) -> (8, 128) output relayout into decomp2:
    # pima[8*j + i, :] = ima[4*i + j, :]
    perm = (ROW_GROUPS * jnp.arange(OUT_ROWS)[None, :]
            + jnp.arange(ROW_GROUPS)[:, None]).reshape(-1)
    pima = ima[perm, :]
    # Additive attention mask: 0 within a batch, -1e30 across batches.
    bid = jnp.arange(BL) // L
    attn_mask = jnp.where(bid[:, None] == bid[None, :], 0.0, _NEG_INF)
    attn_mask = attn_mask.astype(jnp.float32)

    slab = jnp.zeros((128, 128), jnp.float32)
    slab = slab.at[0:32, 0:96].set(wqkv)
    slab = slab.at[0:32, 96:128].set(wo)
    slab = slab.at[32:64, 0:64].set(w1t)
    slab = slab.at[32:64, 64:96].set(ima)
    slab = slab.at[32:64, 96:128].set(pima)
    slab = slab.at[64:128, 0:32].set(w2t)
    slab = slab.at[64:65, 32:128].set(bqkv)
    slab = slab.at[72:73, 32:64].set(bo)
    slab = slab.at[96:128, 32:64].set(attn_mask)
    return slab


# ----------------------------- wrapper ---------------------------------------
@jax.jit
def autoformer_encoder_layer(x, param_slab):
    """x: (B, L, D); param_slab: (128, 128) packed params.
    Returns (out (B, L, D), (self_attn_weight, None)) as in the module."""
    x2 = x.reshape(BL, D).astype(jnp.float32)     # contiguous view, no copy
    out = pl.pallas_call(
        encoder_layer_kernel,
        out_shape=jax.ShapeDtypeStruct((OUT_ROWS, LANES), jnp.float32),
        in_specs=[pl.BlockSpec(memory_space=pltpu.MemorySpace.VMEM),
                  pl.BlockSpec(memory_space=pltpu.MemorySpace.VMEM)],
        out_specs=pl.BlockSpec(memory_space=pltpu.MemorySpace.VMEM),
    )(x2, param_slab)
    # (8, 128) row-major flattening == (B, L, D) row-major flattening.
    return out.reshape(B, L, D).astype(x.dtype), (None, None)


# ----------------------------- reference (plain JAX) -------------------------
def reference(x, wqkv, bqkv, wo, bo, w1t, w2t, avg_mat):
    hi = jax.lax.Precision.HIGHEST
    qkv = jnp.einsum('bld,de->ble', x, wqkv, precision=hi) + bqkv[0]
    q, k, v = qkv[..., :D], qkv[..., D:2 * D], qkv[..., 2 * D:]
    def split(t):
        return t.reshape(B, L, H, HD).transpose(0, 2, 1, 3)
    q, k, v = split(q) * (1.0 / math.sqrt(HD)), split(k), split(v)
    s = jnp.einsum('bhqe,bhke->bhqk', q, k, precision=hi)
    p = jax.nn.softmax(s, axis=-1)
    o = jnp.einsum('bhqk,bhke->bhqe', p, v, precision=hi)
    o = o.transpose(0, 2, 1, 3).reshape(B, L, D)
    attn = jnp.einsum('bld,de->ble', o, wo, precision=hi) + bo[0]
    y = x + attn
    y = y - jnp.einsum('ts,bsd->btd', avg_mat, y, precision=hi)
    h1 = jnp.einsum('bld,df->blf', y, w1t, precision=hi)
    h1 = 0.5 * h1 * (1.0 + jax.lax.erf(h1 / math.sqrt(2.0)))
    z = y + jnp.einsum('blf,fd->bld', h1, w2t, precision=hi)
    z = z - jnp.einsum('ts,bsd->btd', avg_mat, z, precision=hi)
    return z


# ----------------------------- main -------------------------------------------
if __name__ == "__main__":
    key = jax.random.PRNGKey(0)
    keys = jax.random.split(key, 8)

    x = jax.random.normal(keys[0], (B, L, D), dtype=jnp.float32)

    # nn.MultiheadAttention params (in_proj stored transposed: (D, 3D))
    wqkv = jax.random.normal(keys[1], (D, 3 * D), dtype=jnp.float32) / math.sqrt(D)
    bqkv = jax.random.normal(keys[2], (1, 3 * D), dtype=jnp.float32) * 0.02
    wo = jax.random.normal(keys[3], (D, D), dtype=jnp.float32) / math.sqrt(D)
    bo = jax.random.normal(keys[4], (1, D), dtype=jnp.float32) * 0.02

    # FFN Conv1d(kernel_size=1) weights, no bias (decomp=True), stored (in, out)
    w1t = jax.random.normal(keys[5], (D, DFF), dtype=jnp.float32) / math.sqrt(D)
    w2t = jax.random.normal(keys[6], (DFF, D), dtype=jnp.float32) / math.sqrt(DFF)

    avg_mat = build_avgpool_matrix(L, LEN_WINDOW)                  # (L, L)
    param_slab = jax.block_until_ready(
        pack_params(wqkv, bqkv, wo, bo, w1t, w2t, avg_mat))        # built once at init

    out, (attn_w, _) = autoformer_encoder_layer(x, param_slab)
    out = jax.block_until_ready(out)

    ref = jax.block_until_ready(reference(x, wqkv, bqkv, wo, bo, w1t, w2t, avg_mat))

    assert out.shape == (B, L, D)
    assert attn_w is None
    assert jnp.allclose(out, ref, atol=1e-2, rtol=1e-2), (
        float(jnp.max(jnp.abs(out - ref))))

    print("KERNEL_OK")
</pallas_src>

<mosaic_0001>
module attributes {stable_mosaic.version = 11 : i64} {
  func.func @encoder_layer_kernel(%arg0: memref<32x32xf32, #tpu.memory_space<vmem>>, %arg1: memref<128x128xf32, #tpu.memory_space<vmem>>, %arg2: memref<8x128xf32, #tpu.memory_space<vmem>>) attributes {dimension_semantics = [], scalar_prefetch = 0 : i64, scratch_operands = 0 : i64, tpu.core_type = #tpu.core_type<tc>} {
    %c0 = arith.constant 0 : index
    %c0_0 = arith.constant 0 : index
    %0 = vector.load %arg1[%c0, %c0_0] : memref<128x128xf32, #tpu.memory_space<vmem>>, vector<32x96xf32>
    %c0_1 = arith.constant 0 : index
    %c96 = arith.constant 96 : index
    %1 = vector.load %arg1[%c0_1, %c96] : memref<128x128xf32, #tpu.memory_space<vmem>>, vector<32x32xf32>
    %c32 = arith.constant 32 : index
    %c0_2 = arith.constant 0 : index
    %2 = vector.load %arg1[%c32, %c0_2] : memref<128x128xf32, #tpu.memory_space<vmem>>, vector<32x64xf32>
    %c32_3 = arith.constant 32 : index
    %c64 = arith.constant 64 : index
    %3 = vector.load %arg1[%c32_3, %c64] : memref<128x128xf32, #tpu.memory_space<vmem>>, vector<32x32xf32>
    %c32_4 = arith.constant 32 : index
    %c96_5 = arith.constant 96 : index
    %4 = vector.load %arg1[%c32_4, %c96_5] : memref<128x128xf32, #tpu.memory_space<vmem>>, vector<32x32xf32>
    %c64_6 = arith.constant 64 : index
    %c0_7 = arith.constant 0 : index
    %5 = vector.load %arg1[%c64_6, %c0_7] : memref<128x128xf32, #tpu.memory_space<vmem>>, vector<64x32xf32>
    %c64_8 = arith.constant 64 : index
    %c32_9 = arith.constant 32 : index
    %6 = vector.load %arg1[%c64_8, %c32_9] : memref<128x128xf32, #tpu.memory_space<vmem>>, vector<1x96xf32>
    %c72 = arith.constant 72 : index
    %c32_10 = arith.constant 32 : index
    %7 = vector.load %arg1[%c72, %c32_10] : memref<128x128xf32, #tpu.memory_space<vmem>>, vector<1x32xf32>
    %c96_11 = arith.constant 96 : index
    %c32_12 = arith.constant 32 : index
    %8 = vector.load %arg1[%c96_11, %c32_12] : memref<128x128xf32, #tpu.memory_space<vmem>>, vector<32x32xf32>
    %c0_13 = arith.constant 0 : index
    %c0_14 = arith.constant 0 : index
    %9 = vector.load %arg0[%c0_13, %c0_14] : memref<32x32xf32, #tpu.memory_space<vmem>>, vector<32x32xf32>
    %cst = arith.constant dense<0.000000e+00> : vector<32x96xf32>
    %10 = tpu.matmul %9, %0, %cst {dimension_numbers = #tpu.dot_dimension_numbers<[1], [0], [0], [1], [0, 0, 1, 1], [], []>} : vector<32x32xf32>, vector<32x96xf32>, vector<32x96xf32> -> vector<32x96xf32>
    %11 = vector.broadcast %6 : vector<1x96xf32> to vector<32x96xf32>
    %12 = arith.addf %10, %11 : vector<32x96xf32>
    %cst_15 = arith.constant 0.000000e+00 : f32
    %13 = vector.broadcast %cst_15 : f32 to vector<32x32xf32>
    %14 = vector.extract_strided_slice %12 {offsets = [0, 0], sizes = [32, 8], strides = [1, 1]} : vector<32x96xf32> to vector<32x8xf32>
    %cst_16 = arith.constant 0.353553385 : f32
    %15 = vector.broadcast %cst_16 : f32 to vector<32x8xf32>
    %16 = arith.mulf %14, %15 : vector<32x8xf32>
    %17 = vector.extract_strided_slice %12 {offsets = [0, 32], sizes = [32, 8], strides = [1, 1]} : vector<32x96xf32> to vector<32x8xf32>
    %18 = vector.extract_strided_slice %12 {offsets = [0, 64], sizes = [32, 8], strides = [1, 1]} : vector<32x96xf32> to vector<32x8xf32>
    %cst_17 = arith.constant dense<0.000000e+00> : vector<32x32xf32>
    %19 = tpu.matmul %16, %17, %cst_17 {dimension_numbers = #tpu.dot_dimension_numbers<[1], [1], [0], [0], [0, 0, 1, 0], [], []>} : vector<32x8xf32>, vector<32x8xf32>, vector<32x32xf32> -> vector<32x32xf32>
    %20 = arith.addf %19, %8 : vector<32x32xf32>
    %cst_18 = arith.constant dense<0xFF800000> : vector<32xf32>
    %21 = vector.multi_reduction <maximumf>, %20, %cst_18 [1] : vector<32x32xf32> to vector<32xf32>
    %22 = vector.shape_cast %21 : vector<32xf32> to vector<32x1xf32>
    %23 = vector.broadcast %22 : vector<32x1xf32> to vector<32x32xf32>
    %24 = arith.subf %20, %23 : vector<32x32xf32>
    %25 = math.exp %24 : vector<32x32xf32>
    %cst_19 = arith.constant dense<0.000000e+00> : vector<32xf32>
    %26 = vector.multi_reduction <add>, %25, %cst_19 [1] : vector<32x32xf32> to vector<32xf32>
    %27 = vector.shape_cast %26 : vector<32xf32> to vector<32x1xf32>
    %28 = tpu.reciprocal %27 {approx = true} : vector<32x1xf32> -> vector<32x1xf32>
    %29 = vector.broadcast %28 : vector<32x1xf32> to vector<32x32xf32>
    %30 = arith.mulf %25, %29 : vector<32x32xf32>
    %cst_20 = arith.constant dense<0.000000e+00> : vector<32x8xf32>
    %31 = tpu.matmul %30, %18, %cst_20 {dimension_numbers = #tpu.dot_dimension_numbers<[1], [0], [0], [1], [0, 0, 1, 1], [], []>} : vector<32x32xf32>, vector<32x8xf32>, vector<32x8xf32> -> vector<32x8xf32>
    %32 = vector.extract_strided_slice %1 {offsets = [0, 0], sizes = [8, 32], strides = [1, 1]} : vector<32x32xf32> to vector<8x32xf32>
    %cst_21 = arith.constant dense<0.000000e+00> : vector<32x32xf32>
    %33 = tpu.matmul %31, %32, %cst_21 {dimension_numbers = #tpu.dot_dimension_numbers<[1], [0], [0], [1], [0, 0, 1, 1], [], []>} : vector<32x8xf32>, vector<8x32xf32>, vector<32x32xf32> -> vector<32x32xf32>
    %34 = arith.addf %13, %33 : vector<32x32xf32>
    %35 = vector.extract_strided_slice %12 {offsets = [0, 8], sizes = [32, 8], strides = [1, 1]} : vector<32x96xf32> to vector<32x8xf32>
    %cst_22 = arith.constant 0.353553385 : f32
    %36 = vector.broadcast %cst_22 : f32 to vector<32x8xf32>
    %37 = arith.mulf %35, %36 : vector<32x8xf32>
    %38 = vector.extract_strided_slice %12 {offsets = [0, 40], sizes = [32, 8], strides = [1, 1]} : vector<32x96xf32> to vector<32x8xf32>
    %39 = vector.extract_strided_slice %12 {offsets = [0, 72], sizes = [32, 8], strides = [1, 1]} : vector<32x96xf32> to vector<32x8xf32>
    %cst_23 = arith.constant dense<0.000000e+00> : vector<32x32xf32>
    %40 = tpu.matmul %37, %38, %cst_23 {dimension_numbers = #tpu.dot_dimension_numbers<[1], [1], [0], [0], [0, 0, 1, 0], [], []>} : vector<32x8xf32>, vector<32x8xf32>, vector<32x32xf32> -> vector<32x32xf32>
    %41 = arith.addf %40, %8 : vector<32x32xf32>
    %cst_24 = arith.constant dense<0xFF800000> : vector<32xf32>
    %42 = vector.multi_reduction <maximumf>, %41, %cst_24 [1] : vector<32x32xf32> to vector<32xf32>
    %43 = vector.shape_cast %42 : vector<32xf32> to vector<32x1xf32>
    %44 = vector.broadcast %43 : vector<32x1xf32> to vector<32x32xf32>
    %45 = arith.subf %41, %44 : vector<32x32xf32>
    %46 = math.exp %45 : vector<32x32xf32>
    %cst_25 = arith.constant dense<0.000000e+00> : vector<32xf32>
    %47 = vector.multi_reduction <add>, %46, %cst_25 [1] : vector<32x32xf32> to vector<32xf32>
    %48 = vector.shape_cast %47 : vector<32xf32> to vector<32x1xf32>
    %49 = tpu.reciprocal %48 {approx = true} : vector<32x1xf32> -> vector<32x1xf32>
    %50 = vector.broadcast %49 : vector<32x1xf32> to vector<32x32xf32>
    %51 = arith.mulf %46, %50 : vector<32x32xf32>
    %cst_26 = arith.constant dense<0.000000e+00> : vector<32x8xf32>
    %52 = tpu.matmul %51, %39, %cst_26 {dimension_numbers = #tpu.dot_dimension_numbers<[1], [0], [0], [1], [0, 0, 1, 1], [], []>} : vector<32x32xf32>, vector<32x8xf32>, vector<32x8xf32> -> vector<32x8xf32>
    %53 = vector.extract_strided_slice %1 {offsets = [8, 0], sizes = [8, 32], strides = [1, 1]} : vector<32x32xf32> to vector<8x32xf32>
    %cst_27 = arith.constant dense<0.000000e+00> : vector<32x32xf32>
    %54 = tpu.matmul %52, %53, %cst_27 {dimension_numbers = #tpu.dot_dimension_numbers<[1], [0], [0], [1], [0, 0, 1, 1], [], []>} : vector<32x8xf32>, vector<8x32xf32>, vector<32x32xf32> -> vector<32x32xf32>
    %55 = arith.addf %34, %54 : vector<32x32xf32>
    %56 = vector.extract_strided_slice %12 {offsets = [0, 16], sizes = [32, 8], strides = [1, 1]} : vector<32x96xf32> to vector<32x8xf32>
    %cst_28 = arith.constant 0.353553385 : f32
    %57 = vector.broadcast %cst_28 : f32 to vector<32x8xf32>
    %58 = arith.mulf %56, %57 : vector<32x8xf32>
    %59 = vector.extract_strided_slice %12 {offsets = [0, 48], sizes = [32, 8], strides = [1, 1]} : vector<32x96xf32> to vector<32x8xf32>
    %60 = vector.extract_strided_slice %12 {offsets = [0, 80], sizes = [32, 8], strides = [1, 1]} : vector<32x96xf32> to vector<32x8xf32>
    %cst_29 = arith.constant dense<0.000000e+00> : vector<32x32xf32>
    %61 = tpu.matmul %58, %59, %cst_29 {dimension_numbers = #tpu.dot_dimension_numbers<[1], [1], [0], [0], [0, 0, 1, 0], [], []>} : vector<32x8xf32>, vector<32x8xf32>, vector<32x32xf32> -> vector<32x32xf32>
    %62 = arith.addf %61, %8 : vector<32x32xf32>
    %cst_30 = arith.constant dense<0xFF800000> : vector<32xf32>
    %63 = vector.multi_reduction <maximumf>, %62, %cst_30 [1] : vector<32x32xf32> to vector<32xf32>
    %64 = vector.shape_cast %63 : vector<32xf32> to vector<32x1xf32>
    %65 = vector.broadcast %64 : vector<32x1xf32> to vector<32x32xf32>
    %66 = arith.subf %62, %65 : vector<32x32xf32>
    %67 = math.exp %66 : vector<32x32xf32>
    %cst_31 = arith.constant dense<0.000000e+00> : vector<32xf32>
    %68 = vector.multi_reduction <add>, %67, %cst_31 [1] : vector<32x32xf32> to vector<32xf32>
    %69 = vector.shape_cast %68 : vector<32xf32> to vector<32x1xf32>
    %70 = tpu.reciprocal %69 {approx = true} : vector<32x1xf32> -> vector<32x1xf32>
    %71 = vector.broadcast %70 : vector<32x1xf32> to vector<32x32xf32>
    %72 = arith.mulf %67, %71 : vector<32x32xf32>
    %cst_32 = arith.constant dense<0.000000e+00> : vector<32x8xf32>
    %73 = tpu.matmul %72, %60, %cst_32 {dimension_numbers = #tpu.dot_dimension_numbers<[1], [0], [0], [1], [0, 0, 1, 1], [], []>} : vector<32x32xf32>, vector<32x8xf32>, vector<32x8xf32> -> vector<32x8xf32>
    %74 = vector.extract_strided_slice %1 {offsets = [16, 0], sizes = [8, 32], strides = [1, 1]} : vector<32x32xf32> to vector<8x32xf32>
    %cst_33 = arith.constant dense<0.000000e+00> : vector<32x32xf32>
    %75 = tpu.matmul %73, %74, %cst_33 {dimension_numbers = #tpu.dot_dimension_numbers<[1], [0], [0], [1], [0, 0, 1, 1], [], []>} : vector<32x8xf32>, vector<8x32xf32>, vector<32x32xf32> -> vector<32x32xf32>
    %76 = arith.addf %55, %75 : vector<32x32xf32>
    %77 = vector.extract_strided_slice %12 {offsets = [0, 24], sizes = [32, 8], strides = [1, 1]} : vector<32x96xf32> to vector<32x8xf32>
    %cst_34 = arith.constant 0.353553385 : f32
    %78 = vector.broadcast %cst_34 : f32 to vector<32x8xf32>
    %79 = arith.mulf %77, %78 : vector<32x8xf32>
    %80 = vector.extract_strided_slice %12 {offsets = [0, 56], sizes = [32, 8], strides = [1, 1]} : vector<32x96xf32> to vector<32x8xf32>
    %81 = vector.extract_strided_slice %12 {offsets = [0, 88], sizes = [32, 8], strides = [1, 1]} : vector<32x96xf32> to vector<32x8xf32>
    %cst_35 = arith.constant dense<0.000000e+00> : vector<32x32xf32>
    %82 = tpu.matmul %79, %80, %cst_35 {dimension_numbers = #tpu.dot_dimension_numbers<[1], [1], [0], [0], [0, 0, 1, 0], [], []>} : vector<32x8xf32>, vector<32x8xf32>, vector<32x32xf32> -> vector<32x32xf32>
    %83 = arith.addf %82, %8 : vector<32x32xf32>
    %cst_36 = arith.constant dense<0xFF800000> : vector<32xf32>
    %84 = vector.multi_reduction <maximumf>, %83, %cst_36 [1] : vector<32x32xf32> to vector<32xf32>
    %85 = vector.shape_cast %84 : vector<32xf32> to vector<32x1xf32>
    %86 = vector.broadcast %85 : vector<32x1xf32> to vector<32x32xf32>
    %87 = arith.subf %83, %86 : vector<32x32xf32>
    %88 = math.exp %87 : vector<32x32xf32>
    %cst_37 = arith.constant dense<0.000000e+00> : vector<32xf32>
    %89 = vector.multi_reduction <add>, %88, %cst_37 [1] : vector<32x32xf32> to vector<32xf32>
    %90 = vector.shape_cast %89 : vector<32xf32> to vector<32x1xf32>
    %91 = tpu.reciprocal %90 {approx = true} : vector<32x1xf32> -> vector<32x1xf32>
    %92 = vector.broadcast %91 : vector<32x1xf32> to vector<32x32xf32>
    %93 = arith.mulf %88, %92 : vector<32x32xf32>
    %cst_38 = arith.constant dense<0.000000e+00> : vector<32x8xf32>
    %94 = tpu.matmul %93, %81, %cst_38 {dimension_numbers = #tpu.dot_dimension_numbers<[1], [0], [0], [1], [0, 0, 1, 1], [], []>} : vector<32x32xf32>, vector<32x8xf32>, vector<32x8xf32> -> vector<32x8xf32>
    %95 = vector.extract_strided_slice %1 {offsets = [24, 0], sizes = [8, 32], strides = [1, 1]} : vector<32x32xf32> to vector<8x32xf32>
    %cst_39 = arith.constant dense<0.000000e+00> : vector<32x32xf32>
    %96 = tpu.matmul %94, %95, %cst_39 {dimension_numbers = #tpu.dot_dimension_numbers<[1], [0], [0], [1], [0, 0, 1, 1], [], []>} : vector<32x8xf32>, vector<8x32xf32>, vector<32x32xf32> -> vector<32x32xf32>
    %97 = arith.addf %76, %96 : vector<32x32xf32>
    %98 = vector.broadcast %7 : vector<1x32xf32> to vector<32x32xf32>
    %99 = arith.addf %97, %98 : vector<32x32xf32>
    %100 = arith.addf %9, %99 : vector<32x32xf32>
    %cst_40 = arith.constant dense<0.000000e+00> : vector<32x32xf32>
    %101 = tpu.matmul %3, %100, %cst_40 {dimension_numbers = #tpu.dot_dimension_numbers<[1], [0], [0], [1], [0, 0, 1, 1], [], []>} : vector<32x32xf32>, vector<32x32xf32>, vector<32x32xf32> -> vector<32x32xf32>
    %cst_41 = arith.constant dense<0.000000e+00> : vector<32x64xf32>
    %102 = tpu.matmul %101, %2, %cst_41 {dimension_numbers = #tpu.dot_dimension_numbers<[1], [0], [0], [1], [0, 0, 1, 1], [], []>} : vector<32x32xf32>, vector<32x64xf32>, vector<32x64xf32> -> vector<32x64xf32>
    %cst_42 = arith.constant 5.000000e-01 : f32
    %103 = vector.broadcast %cst_42 : f32 to vector<32x64xf32>
    %104 = arith.mulf %103, %102 : vector<32x64xf32>
    %cst_43 = arith.constant 0.707106769 : f32
    %105 = vector.broadcast %cst_43 : f32 to vector<32x64xf32>
    %106 = arith.mulf %102, %105 : vector<32x64xf32>
    %107 = math.erf %106 : vector<32x64xf32>
    %cst_44 = arith.constant 1.000000e+00 : f32
    %108 = vector.broadcast %cst_44 : f32 to vector<32x64xf32>
    %109 = arith.addf %108, %107 : vector<32x64xf32>
    %110 = arith.mulf %104, %109 : vector<32x64xf32>
    %cst_45 = arith.constant dense<0.000000e+00> : vector<32x32xf32>
    %111 = tpu.matmul %110, %5, %cst_45 {dimension_numbers = #tpu.dot_dimension_numbers<[1], [0], [0], [1], [0, 0, 1, 1], [], []>} : vector<32x64xf32>, vector<64x32xf32>, vector<32x32xf32> -> vector<32x32xf32>
    %112 = arith.addf %101, %111 : vector<32x32xf32>
    %113 = vector.extract_strided_slice %4 {offsets = [0, 0], sizes = [8, 32], strides = [1, 1]} : vector<32x32xf32> to vector<8x32xf32>
    %cst_46 = arith.constant dense<0.000000e+00> : vector<8x32xf32>
    %114 = tpu.matmul %113, %112, %cst_46 {dimension_numbers = #tpu.dot_dimension_numbers<[1], [0], [0], [1], [0, 0, 1, 1], [], []>} : vector<8x32xf32>, vector<32x32xf32>, vector<8x32xf32> -> vector<8x32xf32>
    %115 = vector.extract_strided_slice %4 {offsets = [8, 0], sizes = [8, 32], strides = [1, 1]} : vector<32x32xf32> to vector<8x32xf32>
    %cst_47 = arith.constant dense<0.000000e+00> : vector<8x32xf32>
    %116 = tpu.matmul %115, %112, %cst_47 {dimension_numbers = #tpu.dot_dimension_numbers<[1], [0], [0], [1], [0, 0, 1, 1], [], []>} : vector<8x32xf32>, vector<32x32xf32>, vector<8x32xf32> -> vector<8x32xf32>
    %117 = vector.extract_strided_slice %4 {offsets = [16, 0], sizes = [8, 32], strides = [1, 1]} : vector<32x32xf32> to vector<8x32xf32>
    %cst_48 = arith.constant dense<0.000000e+00> : vector<8x32xf32>
    %118 = tpu.matmul %117, %112, %cst_48 {dimension_numbers = #tpu.dot_dimension_numbers<[1], [0], [0], [1], [0, 0, 1, 1], [], []>} : vector<8x32xf32>, vector<32x32xf32>, vector<8x32xf32> -> vector<8x32xf32>
    %119 = vector.extract_strided_slice %4 {offsets = [24, 0], sizes = [8, 32], strides = [1, 1]} : vector<32x32xf32> to vector<8x32xf32>
    %cst_49 = arith.constant dense<0.000000e+00> : vector<8x32xf32>
    %120 = tpu.matmul %119, %112, %cst_49 {dimension_numbers = #tpu.dot_dimension_numbers<[1], [0], [0], [1], [0, 0, 1, 1], [], []>} : vector<8x32xf32>, vector<32x32xf32>, vector<8x32xf32> -> vector<8x32xf32>
    %121 = tpu.concatenate %114, %116, %118, %120 in 1 : vector<8x32xf32>, vector<8x32xf32>, vector<8x32xf32>, vector<8x32xf32> -> vector<8x128xf32>
    %c0_50 = arith.constant 0 : index
    %c0_51 = arith.constant 0 : index
    %122 = vector.load %arg2[%c0_50, %c0_51] : memref<8x128xf32, #tpu.memory_space<vmem>>, vector<8x128xf32>
    tpu.vector_store %arg2[%c0_50, %c0_51], %121 {strides = array<i32>} : memref<8x128xf32, #tpu.memory_space<vmem>>, vector<8x128xf32>,
    return
  }
}

</mosaic_0001>

<bundles_post_ra>
// kernel: autoformer_encoder_layer.1
= control target key start
LH: loop header
LB: loop body
LE: loop exit
PB: predicated region body
PF: predicated region fallthrough
CT: control target
= control target key end

     0   :  { %7 = vsyncpa [#allocation3], 0  ;;  %s2138_s0 = inlined_call_operand.hbm [shape: f32[32,32], index: 0, kind: input, shape index: {}]   ;;  %s2139_s1 = inlined_call_operand.hbm [shape: f32[128,128], index: 1, kind: input, shape index: {}]   ;;  %s2140_s2 = inlined_call_operand.vmem [shape: f32[8,128], index: 2, kind: output, shape index: {}]  }
   0x1   :  { %s13_s11 = sshll.u32 %s2138_s0, 4  ;;  %s14_s11 = int_to_ptr.hbm [resolvable:$true] %s13_s11 }
   0x2   :  { %8 = vsyncpa [#allocation5], 0  ;;  %s1671_s12 = smov [#allocation2]   ;;  %s26_s16 = sshll.u32 %s2139_s1, 4  ;;  %s27_s16 = int_to_ptr.hbm [resolvable:$true] %s26_s16 }
   0x3   :  { %s15_s13 = sshll.u32 %s1671_s12, 4  ;;  %s1672_s17 = smov 128   ;;  %s16_s13 = int_to_ptr.vmem [resolvable:$true] %s15_s13 }
   0x4   :  { %s1673_s18 = smov 8   ;;  %s1674_s19 = smov [#allocation4]  }
   0x5   :  { %21 = dma.hbm_to_vmem [thread:$0]  %s14_s11, 512, %s16_s13, [#allocation3], %s1672_s17, %s1672_s17, %s1673_s18  }
   0x6   :  { %s28_s20 = sshll.u32 %s1674_s19, 4  ;;  %s29_s20 = int_to_ptr.vmem [resolvable:$true] %s28_s20 }
   0x7   :  { %34 = dma.hbm_to_vmem [thread:$0]  %s27_s16, 2048, %s29_s20, [#allocation5], %s1672_s17, %s1672_s17, %s1673_s18  }
   0x8   :  { %1667 = dma.done.wait [#allocation3], 512  }
   0x9   :  { %1668 = vsyncadd [#allocation3], 4294966784 }
   0xa   :  { %1669 = dma.done.wait [#allocation5], 2048  }
   0xb   :  { %1670 = vsyncadd [#allocation5], 4294965248  ;;  %v1708_v0 = vld [vmem:[#allocation4 + $0x18] sm:$0xff]  ;;  %v1710_v1 = vld [vmem:[#allocation4 + $0x10] sm:$0xff]  ;;  %s1675_s0 = smov 96   ;;  %vm70_vm0 = vcmask 261120  }
   0xc   :  { %95 = vmatpush.msra.mxu0 %v1708_v0  ;;  %v1713_v2 = vld [vmem:[#allocation4 + $0x8] sm:$0xff]  ;;  %v1541_v3 = vld [vmem:[#allocation4 + $0x40] ss:$0 sm:$0xff]  ;;  %v63_v7 = vld [vmem:[#allocation2 + $0x10] sm:$0xff]  ;;  %vm144_vm1 = vcmask 64512   ;;  %s1676_s1 = smov 64  }
   0xd   :  { %v1716_v4 = vld [vmem:[#allocation4] sm:$0xff]  ;;  %67 = vrot.lane.b32.xlu0 %v1541_v3, %s1675_s0  ;;  %v62_v6 = vld [vmem:[#allocation2 + $0x8] sm:$0xff]  ;;  %v64_v8 = vld [vmem:[#allocation2 + $0x18] sm:$0xff]  ;;  %s1677_s21 = smov 88   ;;  %s1678_s22 = smov 32   ;;  %vm1232_vm8 = vcmask 523264  }
   0xe   :  { %96 = vmatpush.msra.mxu0 %v1710_v1  ;;  %v61_v5 = vld [vmem:[#allocation2] sm:$0xff]  ;;  %v1741_v20 = vld [vmem:[#allocation4 + $0x68] sm:$0xff]  ;;  %v1747_v22 = vld [vmem:[#allocation4 + $0x70] sm:$0xff]  ;;  %s1679_s23 = smov 120   ;;  %s1680_s24 = smov 80  }
   0xf   :  { %v1749_v23 = vld [vmem:[#allocation4 + $0x60] sm:$0xff]  ;;  %v1758_v26 = vld [vmem:[#allocation4 + $0x78] sm:$0xff]  ;;  %s1681_s25 = smov 72   ;;  %s1682_s26 = smov 112  }
  0x10   :  { %97 = vmatpush.msra.mxu0 %v1713_v2  ;;  %s1683_s27 = smov 104   ;;  %s1684_s28 = smov 56  }
  0x11   :  { %s1685_s29 = smov 48   ;;  %s1686_s30 = smov 40  }
  0x12   :  { %98 = vmatpush.msra.mxu0 %v1716_v4 }
  0x13   :  { %1397 = vmatmul.msk.f32.vlgmr.msra.gmra.mxu0 %vm70_vm0, %v61_v5 }
  0x1b   :  { %1398 = vmatmul.msk.f32.gmra.mxu0 %vm70_vm0, %v62_v6 }
  0x23   :  { %1399 = vmatmul.msk.f32.gmra.mxu0 %vm70_vm0, %v63_v7 }
  0x2b   :  { %1400 = vmatmul.msk.f32.gmra.mxu0 %vm70_vm0, %v64_v8 }
  0x7f   :  { %v68_v9 = vpop.permute.xlu0 %67 }
  0x90   :  { %v100_v10 = vpop.f32.mrf.mxu0 }
  0x91   :  { %v1725_v11 = vadd.f32 %v100_v10, %v68_v9 }
  0x93   :  { %120 = vrot.lane.b32.xlu2 %v1725_v11, %s1675_s0  ;;  %v112_v25 = vmul.f32 0.35355338, %v1725_v11 }
  0x98   :  { %v103_v12 = vpop.f32.mrf.mxu0 }
  0x99   :  { %v1733_v16 = vadd.f32 %v103_v12, %v68_v9 }
  0x9b   :  { %132 = vrot.lane.b32.xlu2 %v1749_v23, %s1675_s0  ;;  %v113_v27 = vmul.f32 0.35355338, %v1733_v16  ;;  %v1798_v47 = vpack.i.bf16 %v1725_v11, %v1733_v16 }
  0xa0   :  { %v106_v13 = vpop.f32.mrf.mxu0 }
  0xa1   :  { %v1729_v14 = vadd.f32 %v106_v13, %v68_v9 }
  0xa3   :  { %124 = vrot.lane.b32.xlu1 %v1729_v14, %s1675_s0  ;;  %138 = vrot.lane.b32.xlu2 %v1758_v26, %s1675_s0  ;;  %v1766_v28 = vmul.f32 0.35355338, %v1729_v14 }
  0xa8   :  { %v109_v15 = vpop.f32.mrf.mxu0 }
  0xa9   :  { %v1735_v17 = vadd.f32 %v109_v15, %v68_v9 }
  0xab   :  { %126 = vrot.lane.b32.xlu0 %v1735_v17, %s1675_s0  ;;  %122 = vrot.lane.b32.xlu1 %v1733_v16, %s1675_s0  ;;  %v115_v29 = vmul.f32 0.35355338, %v1735_v17  ;;  %v1790_v46 = vpack.i.bf16 %v1729_v14, %v1735_v17 }
  0xb3   :  { %134 = vrot.lane.b32.xlu0 %v1741_v20, %s1675_s0  ;;  %136 = vrot.lane.b32.xlu1 %v1747_v22, %s1675_s0 }
  0xed   :  { %v121_v24 = vpop.permute.xlu2 %120 }
  0xf5   :  { %v1772_v30 = vpop.permute.xlu2 %132 }
  0xfd   :  { %v1784_v42 = vpop.permute.xlu2 %138 }
 0x115   :  { %v125_v18 = vpop.permute.xlu1 %124 }
 0x11d   :  { %v127_v19 = vpop.permute.xlu0 %126  ;;  %v123_v21 = vpop.permute.xlu1 %122 }
 0x11e   :  { %1401 = vmatpush.xpose.msk.msra.mxu1 %vm144_vm1, %v127_v19 }
 0x122   :  { %1402 = vmatpush.xpose.msk.msra.mxu1 %vm144_vm1, %v125_v18 }
 0x125   :  { %v1776_v34 = vpop.permute.xlu0 %134  ;;  %v1780_v38 = vpop.permute.xlu1 %136 }
 0x126   :  { %1403 = vmatpush.xpose.msk.msra.mxu1 %vm144_vm1, %v123_v21 }
 0x12a   :  { %1404 = vmatpush.xpose.msk.msra.mxu1 %vm144_vm1, %v121_v24 }
 0x12d   :  { %1405 = vmatmul.msk.f32.vlgmr.msra.gmra.mxu1 %vm144_vm1, %v112_v25 }
 0x135   :  { %1406 = vmatmul.msk.f32.gmra.mxu1 %vm144_vm1, %v113_v27 }
 0x13d   :  { %1407 = vmatmul.msk.f32.gmra.mxu1 %vm144_vm1, %v1766_v28 }
 0x145   :  { %1408 = vmatmul.msk.f32.gmra.mxu1 %vm144_vm1, %v115_v29 }
 0x1aa   :  { %v182_v31 = vpop.f32.mrf.mxu1 }
 0x1ab   :  { %v183_v32 = vadd.f32 %v182_v31, %v1772_v30 }
 0x1ad   :  { %v194_v33 = vsel %vm70_vm0, %v183_v32, -inf }
 0x1ae   :  { %195 = vmax.xlane.f32.xlu0 %v194_v33 }
 0x1b2   :  { %v185_v35 = vpop.f32.mrf.mxu1 }
 0x1b3   :  { %v186_v36 = vadd.f32 %v185_v35, %v1776_v34 }
 0x1b5   :  { %v197_v37 = vsel %vm70_vm0, %v186_v36, -inf }
 0x1b6   :  { %198 = vmax.xlane.f32.xlu1 %v197_v37 }
 0x1ba   :  { %v188_v39 = vpop.f32.mrf.mxu1 }
 0x1bb   :  { %v189_v40 = vadd.f32 %v188_v39, %v1780_v38 }
 0x1bd   :  { %v200_v41 = vsel %vm70_vm0, %v189_v40, -inf }
 0x1be   :  { %201 = vmax.xlane.f32.xlu2 %v200_v41 }
 0x1c2   :  { %v191_v43 = vpop.f32.mrf.mxu1 }
 0x1c3   :  { %v192_v44 = vadd.f32 %v191_v43, %v1784_v42 }
 0x1c5   :  { %v203_v45 = vsel %vm70_vm0, %v192_v44, -inf }
 0x1c6   :  { %204 = vmax.xlane.f32.xlu2 %v203_v45 }
 0x1cf   :  { %1502 = vrot.lane.b32.xlu1 %v1790_v46, %s1676_s1 }
 0x1d7   :  { %305 = vrot.lane.b32.xlu1 %v1735_v17, %s1677_s21 }
 0x1de   :  { %1507 = vrot.lane.b32.xlu2 %v1798_v47, %s1676_s1 }
 0x1df   :  { %299 = vrot.lane.b32.xlu1 %v1725_v11, %s1677_s21 }
 0x1e6   :  { %303 = vrot.lane.b32.xlu2 %v1729_v14, %s1677_s21 }
 0x1e7   :  { %495 = vrot.lane.b32.xlu1 %v1716_v4, %s1678_s22 }
 0x1ee   :  { %291 = vrot.lane.b32.xlu2 %v112_v25, %s1679_s23 }
 0x1ef   :  { %295 = vrot.lane.b32.xlu1 %v1766_v28, %s1679_s23 }
 0x1f6   :  { %293 = vrot.lane.b32.xlu2 %v113_v27, %s1679_s23 }
 0x1f7   :  { %297 = vrot.lane.b32.xlu1 %v115_v29, %s1679_s23 }
 0x1fe   :  { %551 = vrot.lane.b32.xlu2 %v1729_v14, %s1680_s24 }
 0x1ff   :  { %547 = vrot.lane.b32.xlu1 %v1725_v11, %s1680_s24 }
 0x206   :  { %760 = vrot.lane.b32.xlu2 %v1735_v17, %s1681_s25 }
 0x207   :  { %756 = vrot.lane.b32.xlu1 %v1733_v16, %s1681_s25 }
 0x20e   :  { %539 = vrot.lane.b32.xlu2 %v112_v25, %s1682_s26 }
 0x20f   :  { %746 = vrot.lane.b32.xlu1 %v112_v25, %s1683_s27 }
 0x216   :  { %541 = vrot.lane.b32.xlu2 %v113_v27, %s1682_s26 }
 0x217   :  { %545 = vrot.lane.b32.xlu1 %v115_v29, %s1682_s26 }
 0x21e   :  { %748 = vrot.lane.b32.xlu2 %v113_v27, %s1683_s27 }
 0x221   :  { %v196_v48 = vpop.xlane.xlu0 %195 }
 0x222   :  { %v206_v49 = vsub.f32 %v183_v32, %v196_v48 }
 0x224   :  { %v210_v50 = vmul.f32 1.442695, %v206_v49 }
 0x226   :  { %1543 = vpow2.f32 %v210_v50  ;;  %752 = vrot.lane.b32.xlu2 %v115_v29, %s1683_s27 }
 0x229   :  { %v199_v51 = vpop.xlane.xlu1 %198 }
 0x22a   :  { %v207_v52 = vsub.f32 %v186_v36, %v199_v51 }
 0x22c   :  { %v1544_v53 = vpop.eup %1543  ;;  %v212_v54 = vmul.f32 1.442695, %v207_v52 }
 0x22d   :  { %v218_v55 = vsel %vm70_vm0, %v1544_v53, 0.0 }
 0x22e   :  { %1545 = vpow2.f32 %v212_v54  ;;  %219 = vadd.xlane.f32.xlu0 %v218_v55 }
 0x231   :  { %v202_v56 = vpop.xlane.xlu2 %201 }
 0x232   :  { %v208_v57 = vsub.f32 %v189_v40, %v202_v56 }
 0x234   :  { %v1546_v58 = vpop.eup %1545  ;;  %v214_v59 = vmul.f32 1.442695, %v208_v57 }
 0x235   :  { %v221_v60 = vsel %vm70_vm0, %v1546_v58, 0.0 }
 0x236   :  { %1547 = vpow2.f32 %v214_v59  ;;  %222 = vadd.xlane.f32.xlu0 %v221_v60 }
 0x239   :  { %v205_v61 = vpop.xlane.xlu2 %204 }
 0x23a   :  { %v209_v62 = vsub.f32 %v192_v44, %v205_v61 }
 0x23c   :  { %v1548_v63 = vpop.eup %1547  ;;  %v216_v3 = vmul.f32 1.442695, %v209_v62 }
 0x23d   :  { %v224_v4 = vsel %vm70_vm0, %v1548_v63, 0.0 }
 0x23e   :  { %1549 = vpow2.f32 %v216_v3  ;;  %225 = vadd.xlane.f32.xlu0 %v224_v4 }
 0x241   :  { %v1508_v5 = vpop.permute.xlu2 %1507  ;;  %v1503_v6 = vpop.permute.xlu1 %1502 }
 0x242   :  { %v1504_v7 = vunpack.i.l.bf16 %v1503_v6  ;;  %v1505_v9 = vunpack.i.h.bf16 %v1503_v6  ;;  %v1509_v12 = vunpack.i.l.bf16 %v1508_v5  ;;  %v1510_v13 = vunpack.i.h.bf16 %v1508_v5 }
 0x244   :  { %v1550_v8 = vpop.eup %1549  ;;  %274 = vmatpush.msra.mxu2 %v1504_v7 }
 0x245   :  { %v227_v10 = vsel %vm70_vm0, %v1550_v8, 0.0 }
 0x246   :  { %275 = vmatpush.msra.mxu2 %v1505_v9  ;;  %228 = vadd.xlane.f32.xlu0 %v227_v10 }
 0x248   :  { %276 = vmatpush.msra.mxu2 %v1509_v12 }
 0x249   :  { %v304_v15 = vpop.permute.xlu2 %303  ;;  %v306_v18 = vpop.permute.xlu1 %305 }
 0x24a   :  { %277 = vmatpush.msra.mxu2 %v1510_v13  ;;  %1413 = vmatpush.xpose.msk.msra.mxu3 %vm144_vm1, %v306_v18 }
 0x24e   :  { %1414 = vmatpush.xpose.msk.msra.mxu3 %vm144_vm1, %v304_v15 }
 0x251   :  { %v292_v19 = vpop.permute.xlu2 %291  ;;  %v300_v21 = vpop.permute.xlu1 %299 }
 0x259   :  { %v294_v24 = vpop.permute.xlu2 %293  ;;  %v496_v25 = vpop.permute.xlu1 %495 }
 0x25a   :  { %301 = vrot.lane.b32.xlu0 %v1733_v16, %s1677_s21  ;;  %525 = vmatpush.msrb.mxu1 %v496_v25 }
 0x261   :  { %v552_v27 = vpop.permute.xlu2 %551  ;;  %v296_v40 = vpop.permute.xlu1 %295 }
 0x262   :  { %553 = vrot.lane.b32.xlu0 %v1735_v17, %s1680_s24 }
 0x269   :  { %v761_v29 = vpop.permute.xlu2 %760  ;;  %v298_v43 = vpop.permute.xlu1 %297 }
 0x26a   :  { %1449 = vmatpush.xpose.msk.msra.mxu1 %vm144_vm1, %v761_v29  ;;  %549 = vrot.lane.b32.xlu0 %v1733_v16, %s1680_s24 }
 0x271   :  { %v548_v48 = vpop.permute.xlu1 %547  ;;  %v540_v52 = vpop.permute.xlu2 %539 }
 0x272   :  { %758 = vrot.lane.b32.xlu0 %v1729_v14, %s1681_s25 }
 0x279   :  { %v757_v50 = vpop.permute.xlu1 %756 }
 0x27a   :  { %754 = vrot.lane.b32.xlu0 %v1725_v11, %s1681_s25 }
 0x281   :  { %v747_v54 = vpop.permute.xlu1 %746 }
 0x282   :  { %543 = vrot.lane.b32.xlu0 %v1766_v28, %s1682_s26 }
 0x289   :  { %v546_v56 = vpop.permute.xlu1 %545 }
 0x28a   :  { %750 = vrot.lane.b32.xlu0 %v1766_v28, %s1683_s27 }
 0x2a1   :  { %v220_v31 = vpop.xlane.xlu0 %219 }
 0x2a2   :  { %1551 = vrcp.f32 %v220_v31 }
 0x2a8   :  { %v1552_v17 = vpop.eup %1551 }
 0x2a9   :  { %v223_v32 = vpop.xlane.xlu0 %222  ;;  %v234_v33 = vmul.f32 %v1552_v17, %v1544_v53  ;;  %v542_v53 = vpop.permute.xlu2 %541 }
 0x2aa   :  { %1553 = vrcp.f32 %v223_v32 }
 0x2ab   :  { %1409 = vmatmul.msk.f32.vlgmr.msra.gmra.mxu2 %vm70_vm0, %v234_v33 }
 0x2b0   :  { %v1554_v16 = vpop.eup %1553 }
 0x2b1   :  { %v226_v35 = vpop.xlane.xlu0 %225  ;;  %v235_v14 = vmul.f32 %v1554_v16, %v1546_v58  ;;  %v749_v61 = vpop.permute.xlu2 %748 }
 0x2b2   :  { %1555 = vrcp.f32 %v226_v35 }
 0x2b3   :  { %1410 = vmatmul.msk.f32.gmra.mxu2 %vm70_vm0, %v235_v14 }
 0x2b8   :  { %v1556_v11 = vpop.eup %1555 }
 0x2b9   :  { %v229_v36 = vpop.xlane.xlu0 %228  ;;  %v236_v37 = vmul.f32 %v1556_v11, %v1548_v63 }
 0x2ba   :  { %1557 = vrcp.f32 %v229_v36 }
 0x2bb   :  { %1411 = vmatmul.msk.f32.gmra.mxu2 %vm70_vm0, %v236_v37 }
 0x2c0   :  { %v1558_v28 = vpop.eup %1557 }
 0x2c1   :  { %v237_v39 = vmul.f32 %v1558_v28, %v1550_v8  ;;  %v753_v8 = vpop.permute.xlu2 %752 }
 0x2c3   :  { %1412 = vmatmul.msk.f32.gmra.mxu2 %vm70_vm0, %v237_v39 }
 0x2cc   :  { %v302_v41 = vpop.permute.xlu0 %301 }
 0x2cd   :  { %1415 = vmatpush.xpose.msk.msra.mxu3 %vm144_vm1, %v302_v41 }
 0x2d1   :  { %1416 = vmatpush.xpose.msk.msra.mxu3 %vm144_vm1, %v300_v21 }
 0x2d4   :  { %1417 = vmatmul.msk.f32.vlgmr.msra.gmra.mxu3 %vm144_vm1, %v292_v19  ;;  %v554_v44 = vpop.permute.xlu0 %553 }
 0x2d5   :  { %1433 = vmatpush.xpose.msk.msrb.mxu3 %vm144_vm1, %v554_v44 }
 0x2d9   :  { %1434 = vmatpush.xpose.msk.msrb.mxu3 %vm144_vm1, %v552_v27 }
 0x2dc   :  { %1418 = vmatmul.msk.f32.gmra.mxu3 %vm144_vm1, %v294_v24  ;;  %v550_v45 = vpop.permute.xlu0 %549 }
 0x2dd   :  { %1435 = vmatpush.xpose.msk.msrb.mxu3 %vm144_vm1, %v550_v45 }
 0x2e1   :  { %1436 = vmatpush.xpose.msk.msrb.mxu3 %vm144_vm1, %v548_v48 }
 0x2e4   :  { %1419 = vmatmul.msk.f32.gmra.mxu3 %vm144_vm1, %v296_v40  ;;  %v759_v49 = vpop.permute.xlu0 %758 }
 0x2e5   :  { %1450 = vmatpush.xpose.msk.msra.mxu1 %vm144_vm1, %v759_v49 }
 0x2e9   :  { %1451 = vmatpush.xpose.msk.msra.mxu1 %vm144_vm1, %v757_v50 }
 0x2ec   :  { %1420 = vmatmul.msk.f32.gmra.mxu3 %vm144_vm1, %v298_v43  ;;  %v755_v51 = vpop.permute.xlu0 %754 }
 0x2ed   :  { %1452 = vmatpush.xpose.msk.msra.mxu1 %vm144_vm1, %v755_v51 }
 0x2f4   :  { %1437 = vmatmul.msk.f32.vlgmr.msrb.gmra.mxu3 %vm144_vm1, %v540_v52  ;;  %v544_v55 = vpop.permute.xlu0 %543 }
 0x2fc   :  { %1438 = vmatmul.msk.f32.gmra.mxu3 %vm144_vm1, %v542_v53  ;;  %v751_v4 = vpop.permute.xlu0 %750 }
 0x304   :  { %1439 = vmatmul.msk.f32.gmra.mxu3 %vm144_vm1, %v544_v55 }
 0x30c   :  { %1440 = vmatmul.msk.f32.gmra.mxu3 %vm144_vm1, %v546_v56 }
 0x32e   :  { %v279_v57 = vpop.f32.mrf.mxu2 }
 0x32f   :  { %1429 = vmatmul.msk.f32.vlgmr.msrb.gmra.mxu1 %vm144_vm1, %v279_v57 }
 0x336   :  { %v282_v58 = vpop.f32.mrf.mxu2 }
 0x337   :  { %1430 = vmatmul.msk.f32.gmra.mxu1 %vm144_vm1, %v282_v58 }
 0x33e   :  { %v285_v59 = vpop.f32.mrf.mxu2 }
 0x33f   :  { %1431 = vmatmul.msk.f32.gmra.mxu1 %vm144_vm1, %v285_v59 }
 0x346   :  { %v288_v60 = vpop.f32.mrf.mxu2 }
 0x347   :  { %1432 = vmatmul.msk.f32.gmra.mxu1 %vm144_vm1, %v288_v60 }
 0x34f   :  { %1453 = vmatmul.msk.f32.vlgmr.msra.gmra.mxu1 %vm144_vm1, %v747_v54 }
 0x357   :  { %v340_v62 = vpop.f32.mrf.mxu3  ;;  %1454 = vmatmul.msk.f32.gmra.mxu1 %vm144_vm1, %v749_v61 }
 0x358   :  { %v341_v63 = vadd.f32 %v340_v62, %v1772_v30 }
 0x35a   :  { %v352_v3 = vsel %vm70_vm0, %v341_v63, -inf }
 0x35b   :  { %353 = vmax.xlane.f32.xlu1 %v352_v3 }
 0x35f   :  { %v343_v5 = vpop.f32.mrf.mxu3  ;;  %1455 = vmatmul.msk.f32.gmra.mxu1 %vm144_vm1, %v751_v4 }
 0x360   :  { %v344_v6 = vadd.f32 %v343_v5, %v1776_v34 }
 0x362   :  { %v355_v7 = vsel %vm70_vm0, %v344_v6, -inf }
 0x363   :  { %356 = vmax.xlane.f32.xlu0 %v355_v7 }
 0x367   :  { %v346_v9 = vpop.f32.mrf.mxu3  ;;  %1456 = vmatmul.msk.f32.gmra.mxu1 %vm144_vm1, %v753_v8 }
 0x368   :  { %v347_v10 = vadd.f32 %v346_v9, %v1780_v38 }
 0x36a   :  { %v358_v12 = vsel %vm70_vm0, %v347_v10, -inf }
 0x36b   :  { %359 = vmax.xlane.f32.xlu2 %v358_v12 }
 0x36f   :  { %v349_v13 = vpop.f32.mrf.mxu3 }
 0x370   :  { %v350_v15 = vadd.f32 %v349_v13, %v1784_v42 }
 0x372   :  { %v361_v18 = vsel %vm70_vm0, %v350_v15, -inf }
 0x373   :  { %362 = vmax.xlane.f32.xlu1 %v361_v18 }
 0x377   :  { %v588_v19 = vpop.f32.mrf.mxu3 }
 0x378   :  { %v1882_v21 = vadd.f32 %v588_v19, %v1772_v30 }
 0x37a   :  { %v600_v24 = vsel %vm70_vm0, %v1882_v21, -inf }
 0x37b   :  { %601 = vmax.xlane.f32.xlu0 %v600_v24 }
 0x37f   :  { %v591_v25 = vpop.f32.mrf.mxu3 }
 0x380   :  { %v1887_v27 = vadd.f32 %v591_v25, %v1776_v34 }
 0x382   :  { %v603_v29 = vsel %vm70_vm0, %v1887_v27, -inf }
 0x383   :  { %604 = vmax.xlane.f32.xlu1 %v603_v29 }
 0x387   :  { %v594_v31 = vpop.f32.mrf.mxu3 }
 0x388   :  { %v1892_v17 = vadd.f32 %v594_v31, %v1780_v38 }
 0x38a   :  { %v606_v32 = vsel %vm70_vm0, %v1892_v17, -inf }
 0x38b   :  { %607 = vmax.xlane.f32.xlu2 %v606_v32 }
 0x38f   :  { %v597_v33 = vpop.f32.mrf.mxu3 }
 0x390   :  { %v1897_v16 = vadd.f32 %v597_v33, %v1784_v42 }
 0x392   :  { %v609_v35 = vsel %vm70_vm0, %v1897_v16, -inf }
 0x393   :  { %610 = vmax.xlane.f32.xlu1 %v609_v35 }
 0x3a3   :  { %1512 = vrot.lane.b32.xlu2 %v1790_v46, %s1684_s28 }
 0x3ac   :  { %v1902_v14 = vpop.f32.mrf.mxu1  ;;  %1517 = vrot.lane.b32.xlu1 %v1798_v47, %s1684_s28 }
 0x3b4   :  { %v1905_v11 = vpop.f32.mrf.mxu1 }
 0x3bc   :  { %v1907_v36 = vpop.f32.mrf.mxu1 }
 0x3c4   :  { %v1909_v37 = vpop.f32.mrf.mxu1 }
 0x3cc   :  { %v795_v28 = vpop.f32.mrf.mxu1 }
 0x3cd   :  { %v796_v4 = vadd.f32 %v795_v28, %v1772_v30 }
 0x3ce   :  { %v354_v39 = vpop.xlane.xlu1 %353 }
 0x3cf   :  { %v364_v40 = vsub.f32 %v341_v63, %v354_v39  ;;  %v807_v5 = vsel %vm70_vm0, %v796_v4, -inf }
 0x3d1   :  { %v368_v41 = vmul.f32 1.442695, %v364_v40 }
 0x3d3   :  { %1559 = vpow2.f32 %v368_v41 }
 0x3d4   :  { %v798_v43 = vpop.f32.mrf.mxu1 }
 0x3d5   :  { %v1935_v31 = vadd.f32 %v798_v43, %v1776_v34 }
 0x3d6   :  { %v357_v44 = vpop.xlane.xlu0 %356 }
 0x3d7   :  { %v365_v45 = vsub.f32 %v344_v6, %v357_v44  ;;  %v810_v32 = vsel %vm70_vm0, %v1935_v31, -inf }
 0x3d9   :  { %v1911_v48 = vpop.eup %1559  ;;  %v370_v49 = vmul.f32 1.442695, %v365_v45 }
 0x3da   :  { %v376_v50 = vsel %vm70_vm0, %v1911_v48, 0.0 }
 0x3db   :  { %1561 = vpow2.f32 %v370_v49  ;;  %377 = vadd.xlane.f32.xlu0 %v376_v50 }
 0x3dc   :  { %v801_v51 = vpop.f32.mrf.mxu1 }
 0x3dd   :  { %v1916_v52 = vadd.f32 %v801_v51, %v1780_v38 }
 0x3de   :  { %v360_v53 = vpop.xlane.xlu2 %359 }
 0x3df   :  { %v366_v54 = vsub.f32 %v347_v10, %v360_v53  ;;  %v813_v55 = vsel %vm70_vm0, %v1916_v52, -inf }
 0x3e0   :  { %814 = vmax.xlane.f32.xlu1 %v813_v55 }
 0x3e1   :  { %v1562_v56 = vpop.eup %1561  ;;  %v372_v57 = vmul.f32 1.442695, %v366_v54 }
 0x3e2   :  { %v379_v58 = vsel %vm70_vm0, %v1562_v56, 0.0 }
 0x3e3   :  { %1563 = vpow2.f32 %v372_v57  ;;  %380 = vadd.xlane.f32.xlu0 %v379_v58 }
 0x3e6   :  { %v363_v59 = vpop.xlane.xlu1 %362 }
 0x3e7   :  { %v367_v60 = vsub.f32 %v350_v15, %v363_v59 }
 0x3e9   :  { %v1564_v61 = vpop.eup %1563  ;;  %v374_v62 = vmul.f32 1.442695, %v367_v60 }
 0x3ea   :  { %v382_v63 = vsel %vm70_vm0, %v1564_v61, 0.0 }
 0x3eb   :  { %1565 = vpow2.f32 %v374_v62  ;;  %383 = vadd.xlane.f32.xlu0 %v382_v63 }
 0x3ee   :  { %v602_v12 = vpop.xlane.xlu0 %601 }
 0x3ef   :  { %v612_v30 = vsub.f32 %v1882_v21, %v602_v12  ;;  %v804_v21 = vpop.f32.mrf.mxu1 }
 0x3f0   :  { %v1940_v33 = vadd.f32 %v804_v21, %v1784_v42 }
 0x3f1   :  { %v1566_v38 = vpop.eup %1565  ;;  %v616_v15 = vmul.f32 1.442695, %v612_v30 }
 0x3f2   :  { %v385_v3 = vsel %vm70_vm0, %v1566_v38, 0.0  ;;  %v816_v35 = vsel %vm70_vm0, %v1940_v33, -inf }
 0x3f3   :  { %386 = vadd.xlane.f32.xlu2 %v385_v3  ;;  %1567 = vpow2.f32 %v616_v15 }
 0x3f6   :  { %v605_v10 = vpop.xlane.xlu1 %604 }
 0x3f7   :  { %v613_v45 = vsub.f32 %v1887_v27, %v605_v10 }
 0x3f9   :  { %v1930_v25 = vpop.eup %1567  ;;  %v618_v50 = vmul.f32 1.442695, %v613_v45 }
 0x3fa   :  { %v624_v29 = vsel %vm70_vm0, %v1930_v25, 0.0 }
 0x3fb   :  { %808 = vmax.xlane.f32.xlu2 %v807_v5 }
 0x3fe   :  { %v1925_v6 = vpop.xlane.xlu2 %607 }
 0x3ff   :  { %1522 = vrot.lane.b32.xlu0 %v1790_v46, %s1685_s29 }
 0x406   :  { %v1513_v7 = vpop.permute.xlu2 %1512  ;;  %v611_v13 = vpop.xlane.xlu1 %610 }
 0x407   :  { %v1514_v8 = vunpack.i.l.bf16 %v1513_v7  ;;  %v1515_v9 = vunpack.i.h.bf16 %v1513_v7 }
 0x409   :  { %432 = vmatpush.msrb.mxu0 %v1514_v8 }
 0x40b   :  { %433 = vmatpush.msrb.mxu0 %v1515_v9 }
 0x413   :  { %1532 = vrot.lane.b32.xlu2 %v1798_v47, %s1685_s29 }
 0x41e   :  { %v1518_v18 = vpop.permute.xlu1 %1517 }
 0x41f   :  { %v1519_v19 = vunpack.i.l.bf16 %v1518_v18  ;;  %v1520_v24 = vunpack.i.h.bf16 %v1518_v18 }
 0x421   :  { %434 = vmatpush.msrb.mxu0 %v1519_v19 }
 0x423   :  { %435 = vmatpush.msrb.mxu0 %v1520_v24  ;;  %v614_v24 = vsub.f32 %v1892_v17, %v1925_v6 }
 0x429   :  { %625 = vadd.xlane.f32.xlu0 %v624_v29 }
 0x431   :  { %811 = vmax.xlane.f32.xlu0 %v810_v32 }
 0x439   :  { %817 = vmax.xlane.f32.xlu0 %v816_v35  ;;  %v620_v35 = vmul.f32 1.442695, %v614_v24 }
 0x44d   :  { %1527 = vrot.lane.b32.xlu0 %v1790_v46, %s1686_s30 }
 0x44e   :  { %v378_v28 = vpop.xlane.xlu0 %377 }
 0x44f   :  { %1569 = vrcp.f32 %v378_v28 }
 0x453   :  { %v815_v59 = vpop.xlane.xlu1 %814 }
 0x454   :  { %v821_v62 = vsub.f32 %v1916_v52, %v815_v59 }
 0x455   :  { %v1570_v34 = vpop.eup %1569 }
 0x456   :  { %v381_v39 = vpop.xlane.xlu0 %380  ;;  %v392_v40 = vmul.f32 %v1570_v34, %v1911_v48  ;;  %v615_v48 = vsub.f32 %v1897_v16, %v611_v13 }
 0x457   :  { %1571 = vrcp.f32 %v381_v39 }
 0x458   :  { %1421 = vmatmul.msk.f32.vlgmr.msrb.gmra.mxu0 %vm70_vm0, %v392_v40 }
 0x45d   :  { %v1572_v41 = vpop.eup %1571 }
 0x45e   :  { %v384_v42 = vpop.xlane.xlu0 %383  ;;  %v393_v43 = vmul.f32 %v1572_v41, %v1562_v56  ;;  %v622_v56 = vmul.f32 1.442695, %v615_v48 }
 0x45f   :  { %1573 = vrcp.f32 %v384_v42 }
 0x460   :  { %1422 = vmatmul.msk.f32.gmra.mxu0 %vm70_vm0, %v393_v43 }
 0x465   :  { %v1574_v44 = vpop.eup %1573 }
 0x466   :  { %v387_v49 = vpop.xlane.xlu2 %386  ;;  %v394_v46 = vmul.f32 %v1574_v44, %v1564_v61 }
 0x467   :  { %1575 = vrcp.f32 %v387_v49 }
 0x468   :  { %1423 = vmatmul.msk.f32.gmra.mxu0 %vm70_vm0, %v394_v46  ;;  %1577 = vpow2.f32 %v618_v50 }
 0x46d   :  { %v1576_v51 = vpop.eup %1575 }
 0x46e   :  { %v809_v53 = vpop.xlane.xlu2 %808  ;;  %v395_v54 = vmul.f32 %v1576_v51, %v1566_v38  ;;  %v1578_v60 = vpop.eup %1577 }
 0x46f   :  { %v819_v55 = vsub.f32 %v796_v4, %v809_v53  ;;  %v627_v16 = vsel %vm70_vm0, %v1578_v60, 0.0  ;;  %v827_v4 = vmul.f32 1.442695, %v821_v62 }
 0x470   :  { %1424 = vmatmul.msk.f32.gmra.mxu0 %vm70_vm0, %v395_v54 }
 0x471   :  { %v823_v57 = vmul.f32 1.442695, %v819_v55  ;;  %v1523_v58 = vpop.permute.xlu0 %1522 }
 0x472   :  { %v1524_v27 = vunpack.i.l.bf16 %v1523_v58  ;;  %v1525_v61 = vunpack.i.h.bf16 %v1523_v58 }
 0x473   :  { %1579 = vpow2.f32 %v823_v57 }
 0x474   :  { %680 = vmatpush.msra.mxu0 %v1524_v27  ;;  %1581 = vpow2.f32 %v622_v56 }
 0x475   :  { %1583 = vpow2.f32 %v827_v4 }
 0x476   :  { %v1533_v63 = vpop.permute.xlu2 %1532  ;;  %681 = vmatpush.msra.mxu0 %v1525_v61 }
 0x477   :  { %v1534_v38 = vunpack.i.l.bf16 %v1533_v63  ;;  %628 = vadd.xlane.f32.xlu0 %v627_v16  ;;  %v1535_v5 = vunpack.i.h.bf16 %v1533_v63 }
 0x479   :  { %v1580_v3 = vpop.eup %1579  ;;  %682 = vmatpush.msra.mxu0 %v1534_v38 }
 0x47a   :  { %v831_v7 = vsel %vm70_vm0, %v1580_v3, 0.0  ;;  %v1956_v8 = vpop.eup %1581 }
 0x47b   :  { %832 = vadd.xlane.f32.xlu1 %v831_v7  ;;  %683 = vmatpush.msra.mxu0 %v1535_v5  ;;  %v633_v52 = vsel %vm70_vm0, %v1956_v8, 0.0  ;;  %v1960_v9 = vpop.eup %1583 }
 0x47c   :  { %v837_v10 = vsel %vm70_vm0, %v1960_v9, 0.0 }
 0x47f   :  { %634 = vadd.xlane.f32.xlu0 %v633_v52 }
 0x487   :  { %838 = vadd.xlane.f32.xlu0 %v837_v10 }
 0x494   :  { %1537 = vrot.lane.b32.xlu1 %v1798_v47, %s1686_s30 }
 0x49c   :  { %v626_v12 = vpop.xlane.xlu0 %625 }
 0x49d   :  { %1585 = vrcp.f32 %v626_v12 }
 0x4a3   :  { %v1586_v13 = vpop.eup %1585 }
 0x4a4   :  { %v640_v30 = vmul.f32 %v1586_v13, %v1930_v25  ;;  %v812_v15 = vpop.xlane.xlu0 %811  ;;  %v47_v13 = vld [vmem:[#allocation4 + $0x20] sm:$0xff] }
 0x4a5   :  { %v820_v18 = vsub.f32 %v1935_v31, %v812_v15  ;;  %v49_v15 = vld [vmem:[#allocation4 + $0x30] sm:$0xff] }
 0x4a6   :  { %1441 = vmatmul.msk.f32.vlgmr.msra.gmra.mxu0 %vm70_vm0, %v640_v30  ;;  %v50_v30 = vld [vmem:[#allocation4 + $0x38] sm:$0xff] }
 0x4a7   :  { %v825_v19 = vmul.f32 1.442695, %v820_v18  ;;  %1039 = vmatpush.msrb.mxu1 %v50_v30 }
 0x4a9   :  { %1587 = vpow2.f32 %v825_v19  ;;  %1040 = vmatpush.msrb.mxu1 %v49_v15 }
 0x4ac   :  { %v818_v29 = vpop.xlane.xlu0 %817 }
 0x4ad   :  { %v822_v32 = vsub.f32 %v1940_v33, %v818_v29 }
 0x4af   :  { %v1588_v21 = vpop.eup %1587  ;;  %v829_v47 = vmul.f32 1.442695, %v822_v32 }
 0x4b0   :  { %v834_v28 = vsel %vm70_vm0, %v1588_v21, 0.0 }
 0x4b1   :  { %1589 = vpow2.f32 %v829_v47  ;;  %835 = vadd.xlane.f32.xlu2 %v834_v28 }
 0x4b2   :  { %1591 = vpow2.f32 %v620_v35 }
 0x4b7   :  { %v1590_v25 = vpop.eup %1589 }
 0x4b8   :  { %v840_v31 = vsel %vm70_vm0, %v1590_v25, 0.0  ;;  %v1592_v34 = vpop.eup %1591 }
 0x4b9   :  { %841 = vadd.xlane.f32.xlu0 %v840_v31  ;;  %v630_v39 = vsel %vm70_vm0, %v1592_v34, 0.0 }
 0x4be   :  { %631 = vadd.xlane.f32.xlu1 %v630_v39 }
 0x4bf   :  { %v1528_v17 = vpop.permute.xlu0 %1527 }
 0x4c0   :  { %v1529_v6 = vunpack.i.l.bf16 %v1528_v17  ;;  %v1530_v40 = vunpack.i.h.bf16 %v1528_v17 }
 0x4c2   :  { %887 = vmatpush.msra.mxu3 %v1529_v6 }
 0x4c4   :  { %888 = vmatpush.msra.mxu3 %v1530_v40 }
 0x4c9   :  { %450 = vrot.lane.b32.xlu2 %v1713_v2, %s1678_s22 }
 0x4cd   :  { %698 = vrot.lane.b32.xlu0 %v1710_v1, %s1678_s22 }
 0x4d1   :  { %970 = vrot.lane.b32.xlu2 %v47_v13, %s1676_s1 }
 0x4d5   :  { %v437_v50 = vpop.f32.mrf.mxu0 }
 0x4d7   :  { %905 = vrot.lane.b32.xlu1 %v1708_v0, %s1678_s22 }
 0x4d9   :  { %974 = vrot.lane.b32.xlu2 %v49_v15, %s1676_s1 }
 0x4dd   :  { %v440_v55 = vpop.f32.mrf.mxu0 }
 0x4df   :  { %1278 = vrot.lane.b32.xlu1 %v47_v13, %s1678_s22 }
 0x4e5   :  { %v443_v59 = vpop.f32.mrf.mxu0 }
 0x4e7   :  { %1350 = vrot.lane.b32.xlu1 %v50_v30, %s1678_s22 }
 0x4ea   :  { %v629_v33 = vpop.xlane.xlu0 %628 }
 0x4eb   :  { %1593 = vrcp.f32 %v629_v33 }
 0x4ed   :  { %v446_v63 = vpop.f32.mrf.mxu0 }
 0x4ee   :  { %v833_v43 = vpop.xlane.xlu1 %832 }
 0x4ef   :  { %1595 = vrcp.f32 %v833_v43 }
 0x4f1   :  { %v1594_v41 = vpop.eup %1593 }
 0x4f2   :  { %v641_v42 = vmul.f32 %v1594_v41, %v1578_v60  ;;  %v635_v0 = vpop.xlane.xlu0 %634 }
 0x4f4   :  { %1442 = vmatmul.msk.f32.gmra.mxu0 %vm70_vm0, %v641_v42 }
 0x4f5   :  { %v1596_v45 = vpop.eup %1595 }
 0x4f6   :  { %v847_v2 = vmul.f32 %v1596_v45, %v1580_v3  ;;  %v1542_v3 = vld [vmem:[#allocation4 + $0x48] ss:$0 sm:$0xff] }
 0x4f7   :  { %955 = vrot.lane.b32.xlu0 %v1542_v3, %s1675_s0 }
 0x4fa   :  { %v839_v51 = vpop.xlane.xlu0 %838 }
 0x506   :  { %v1538_v44 = vpop.permute.xlu1 %1537 }
 0x507   :  { %v1539_v49 = vunpack.i.l.bf16 %v1538_v44  ;;  %v1540_v46 = vunpack.i.h.bf16 %v1538_v44 }
 0x509   :  { %889 = vmatpush.msra.mxu3 %v1539_v49 }
 0x50b   :  { %890 = vmatpush.msra.mxu3 %v1540_v46 }
 0x50c   :  { %1457 = vmatmul.msk.f32.vlgmr.msra.gmra.mxu3 %vm70_vm0, %v847_v2 }
 0x50d   :  { %1253 = vmatpush.msrb.mxu3 %v1758_v26 }
 0x50f   :  { %1254 = vmatpush.msrb.mxu3 %v1747_v22 }
 0x511   :  { %1255 = vmatpush.msrb.mxu3 %v1741_v20 }
 0x513   :  { %1256 = vmatpush.msrb.mxu3 %v1749_v23 }
 0x523   :  { %v685_v16 = vpop.f32.mrf.mxu0 }
 0x524   :  { %v836_v1 = vpop.xlane.xlu2 %835 }
 0x525   :  { %1597 = vrcp.f32 %v836_v1 }
 0x526   :  { %1599 = vrcp.f32 %v839_v51 }
 0x52b   :  { %v1598_v48 = vpop.eup %1597 }
 0x52c   :  { %v451_v53 = vpop.permute.xlu2 %450  ;;  %v848_v54 = vmul.f32 %v1598_v48, %v1588_v21  ;;  %v842_v26 = vpop.xlane.xlu0 %841 }
 0x52d   :  { %480 = vmatpush.msrb.mxu2 %v451_v53  ;;  %v1600_v22 = vpop.eup %1599 }
 0x52e   :  { %1425 = vmatmul.msk.f32.vlgmr.msrb.gmra.mxu2 %vm144_vm1, %v437_v50  ;;  %1458 = vmatmul.msk.f32.gmra.mxu3 %vm70_vm0, %v848_v54  ;;  %v849_v23 = vmul.f32 %v1600_v22, %v1960_v9  ;;  %v1615_v50 = vld [vmem:[#allocation2 + $0x18] sm:$0xff] }
 0x531   :  { %v632_v20 = vpop.xlane.xlu1 %631 }
 0x532   :  { %1601 = vrcp.f32 %v632_v20 }
 0x533   :  { %1603 = vrcp.f32 %v842_v26  ;;  %v1618_v26 = vld [vmem:[#allocation2] sm:$0xff] }
 0x534   :  { %1605 = vrcp.f32 %v635_v0  ;;  %v971_v54 = vpop.permute.xlu2 %970 }
 0x536   :  { %1426 = vmatmul.msk.f32.gmra.mxu2 %vm144_vm1, %v440_v55  ;;  %1459 = vmatmul.msk.f32.gmra.mxu3 %vm70_vm0, %v849_v23 }
 0x538   :  { %v1602_v56 = vpop.eup %1601 }
 0x539   :  { %v1604_v57 = vpop.eup %1603  ;;  %v642_v58 = vmul.f32 %v1602_v56, %v1592_v34 }
 0x53a   :  { %v850_v27 = vmul.f32 %v1604_v57, %v1590_v25  ;;  %v1606_v60 = vpop.eup %1605 }
 0x53b   :  { %1443 = vmatmul.msk.f32.gmra.mxu0 %vm70_vm0, %v642_v58  ;;  %v643_v62 = vmul.f32 %v1606_v60, %v1956_v8  ;;  %v48_v8 = vld [vmem:[#allocation4 + $0x28] sm:$0xff] }
 0x53c   :  { %972 = vrot.lane.b32.xlu0 %v48_v8, %s1676_s1  ;;  %1041 = vmatpush.msrb.mxu1 %v48_v8  ;;  %v975_v20 = vpop.permute.xlu2 %974 }
 0x53d   :  { %1302 = vrot.lane.b32.xlu2 %v48_v8, %s1678_s22 }
 0x53e   :  { %1427 = vmatmul.msk.f32.gmra.mxu2 %vm144_vm1, %v443_v59  ;;  %1460 = vmatmul.msk.f32.gmra.mxu3 %vm70_vm0, %v850_v27 }
 0x53f   :  { %v699_v61 = vpop.permute.xlu0 %698  ;;  %1042 = vmatpush.msrb.mxu1 %v47_v13 }
 0x540   :  { %728 = vmatpush.msra.mxu2 %v699_v61 }
 0x543   :  { %1444 = vmatmul.msk.f32.gmra.mxu0 %vm70_vm0, %v643_v62 }
 0x544   :  { %976 = vrot.lane.b32.xlu0 %v50_v30, %s1676_s1 }
 0x546   :  { %1428 = vmatmul.msk.f32.gmra.mxu2 %vm144_vm1, %v446_v63 }
 0x549   :  { %v906_v38 = vpop.permute.xlu1 %905 }
 0x54a   :  { %935 = vmatpush.msrb.mxu0 %v906_v38 }
 0x54c   :  { %1326 = vrot.lane.b32.xlu0 %v49_v15, %s1678_s22 }
 0x54e   :  { %1445 = vmatmul.msk.f32.vlgmr.msra.gmra.mxu2 %vm144_vm1, %v685_v16 }
 0x569   :  { %v956_v46 = vpop.permute.xlu0 %955 }
 0x571   :  { %v688_v4 = vpop.f32.mrf.mxu0 }
 0x572   :  { %1446 = vmatmul.msk.f32.gmra.mxu2 %vm144_vm1, %v688_v4 }
 0x58f   :  { %v892_v5 = vpop.f32.mrf.mxu3 }
 0x590   :  { %1461 = vmatmul.msk.f32.vlgmr.msrb.gmra.mxu0 %vm144_vm1, %v892_v5 }
 0x5ae   :  { %v973_v55 = vpop.permute.xlu0 %972 }
 0x5b1   :  { %v895_v7 = vpop.f32.mrf.mxu3  ;;  %v482_v18 = vpop.f32.mrf.mxu2 }
 0x5b2   :  { %1462 = vmatmul.msk.f32.gmra.mxu0 %vm144_vm1, %v895_v7  ;;  %v528_v40 = vadd.f32 %v1902_v14, %v482_v18  ;;  %v1617_v14 = vld [vmem:[#allocation2 + $0x8] sm:$0xff] }
 0x5b6   :  { %v977_v23 = vpop.permute.xlu0 %976 }
 0x5b8   :  { %v691_v52 = vpop.f32.mrf.mxu0 }
 0x5b9   :  { %1447 = vmatmul.msk.f32.gmra.mxu2 %vm144_vm1, %v691_v52  ;;  %v898_v9 = vpop.f32.mrf.mxu3  ;;  %v485_v19 = vpop.f32.mrf.mxu2 }
 0x5ba   :  { %1463 = vmatmul.msk.f32.gmra.mxu0 %vm144_vm1, %v898_v9  ;;  %v531_v39 = vadd.f32 %v1905_v11, %v485_v19 }
 0x5c0   :  { %v694_v10 = vpop.f32.mrf.mxu0 }
 0x5c1   :  { %1448 = vmatmul.msk.f32.gmra.mxu2 %vm144_vm1, %v694_v10  ;;  %v901_v12 = vpop.f32.mrf.mxu3  ;;  %v488_v24 = vpop.f32.mrf.mxu2 }
 0x5c2   :  { %1464 = vmatmul.msk.f32.gmra.mxu0 %vm144_vm1, %v901_v12  ;;  %v534_v31 = vadd.f32 %v1907_v36, %v488_v24 }
 0x5c9   :  { %v491_v29 = vpop.f32.mrf.mxu2 }
 0x5ca   :  { %v537_v17 = vadd.f32 %v1909_v37, %v491_v29  ;;  %v1616_v37 = vld [vmem:[#allocation2 + $0x10] sm:$0xff] }
 0x5d1   :  { %v730_v21 = vpop.f32.mrf.mxu2 }
 0x5d2   :  { %v742_v44 = vadd.f32 %v730_v21, %v528_v40 }
 0x5f5   :  { %v733_v35 = vpop.f32.mrf.mxu2 }
 0x5f6   :  { %v743_v33 = vadd.f32 %v733_v35, %v531_v39  ;;  %v54_v35 = vld [vmem:[#allocation4 + $0x58] sm:$0xff]  ;;  %v53_v39 = vld [vmem:[#allocation4 + $0x50] sm:$0xff] }
 0x5f7   :  { %1257 = vmatpush.msrb.mxu3 %v54_v35 }
 0x5f9   :  { %1258 = vmatpush.msrb.mxu3 %v53_v39 }
 0x60d   :  { %v937_v32 = vpop.f32.mrf.mxu0 }
 0x60e   :  { %v949_v2 = vadd.f32 %v937_v32, %v742_v44 }
 0x610   :  { %v958_v11 = vadd.f32 %v956_v46, %v949_v2 }
 0x612   :  { %v962_v22 = vadd.f32 %v1618_v26, %v958_v11 }
 0x62f   :  { %v940_v47 = vpop.f32.mrf.mxu0 }
 0x630   :  { %v950_v45 = vadd.f32 %v940_v47, %v743_v33  ;;  %v52_v33 = vld [vmem:[#allocation4 + $0x48] sm:$0xff] }
 0x631   :  { %1259 = vmatpush.msrb.mxu3 %v52_v33 }
 0x632   :  { %v959_v36 = vadd.f32 %v956_v46, %v950_v45 }
 0x634   :  { %v963_v53 = vadd.f32 %v1617_v14, %v959_v36 }
 0x637   :  { %v943_v28 = vpop.f32.mrf.mxu0 }
 0x63c   :  { %v736_v25 = vpop.f32.mrf.mxu2 }
 0x63d   :  { %v744_v34 = vadd.f32 %v736_v25, %v534_v31 }
 0x63f   :  { %v951_v41 = vadd.f32 %v943_v28, %v744_v34  ;;  %v946_v43 = vpop.f32.mrf.mxu0 }
 0x641   :  { %v960_v0 = vadd.f32 %v956_v46, %v951_v41 }
 0x643   :  { %v964_v48 = vadd.f32 %v1616_v37, %v960_v0 }
 0x644   :  { %v739_v6 = vpop.f32.mrf.mxu2 }
 0x645   :  { %v745_v42 = vadd.f32 %v739_v6, %v537_v17 }
 0x647   :  { %v952_v49 = vadd.f32 %v946_v43, %v745_v42 }
 0x649   :  { %v961_v1 = vadd.f32 %v956_v46, %v952_v49  ;;  %v51_v46 = vld [vmem:[#allocation4 + $0x40] sm:$0xff] }
 0x64a   :  { %1260 = vmatpush.msrb.mxu3 %v51_v46 }
 0x64b   :  { %v965_v51 = vadd.f32 %v1615_v50, %v961_v1 }
 0x64d   :  { %998 = vmatpush.msrb.mxu2 %v965_v51 }
 0x64f   :  { %999 = vmatpush.msrb.mxu2 %v964_v48 }
 0x651   :  { %1000 = vmatpush.msrb.mxu2 %v963_v53 }
 0x653   :  { %1001 = vmatpush.msrb.mxu2 %v962_v22 }
 0x654   :  { %1465 = vmatmul.msk.f32.vlgmr.msrb.gmra.mxu2 %vm70_vm0, %v971_v54 }
 0x65c   :  { %1466 = vmatmul.msk.f32.gmra.mxu2 %vm70_vm0, %v973_v55 }
 0x664   :  { %1467 = vmatmul.msk.f32.gmra.mxu2 %vm70_vm0, %v975_v20 }
 0x66c   :  { %1468 = vmatmul.msk.f32.gmra.mxu2 %vm70_vm0, %v977_v23 }
 0x6d7   :  { %v2023_v56 = vpop.f32.mrf.mxu2 }
 0x6d8   :  { %1469 = vmatmul.msk.f32.vlgmr.msrb.gmra.mxu1 %vm70_vm0, %v2023_v56 }
 0x6df   :  { %v2027_v57 = vpop.f32.mrf.mxu2 }
 0x6e0   :  { %1470 = vmatmul.msk.f32.gmra.mxu1 %vm70_vm0, %v2027_v57 }
 0x6e7   :  { %v2031_v58 = vpop.f32.mrf.mxu2 }
 0x6e8   :  { %1471 = vmatmul.msk.f32.gmra.mxu1 %vm70_vm0, %v2031_v58 }
 0x6ef   :  { %v2035_v59 = vpop.f32.mrf.mxu2 }
 0x6f0   :  { %1472 = vmatmul.msk.f32.gmra.mxu1 %vm70_vm0, %v2035_v59 }
 0x755   :  { %v2039_v27 = vpop.f32.mrf.mxu1 }
 0x756   :  { %v2042_v60 = vmul.f32 0.70710677, %v2039_v27 }
 0x758   :  { %v1064_v61 = vmul.f32 %v2042_v60, %v2042_v60 }
 0x75a   :  { %v1065_v62 = vmin.f32 %v1064_v61, 16.0 }
 0x75c   :  { %v1066_v63 = vmul.f32 2.1237322e-06, %v1065_v62  ;;  %v1077_v16 = vmul.f32 3.8918573e-05, %v1065_v62 }
 0x75d   :  { %v2046_v38 = vpop.f32.mrf.mxu1 }
 0x75e   :  { %v1067_v3 = vadd.f32 0.00028619796, %v1066_v63  ;;  %v1078_v4 = vadd.f32 0.001143296, %v1077_v16  ;;  %v2049_v5 = vmul.f32 0.70710677, %v2046_v38 }
 0x760   :  { %v1068_v7 = vmul.f32 %v1067_v3, %v1065_v62  ;;  %v1079_v8 = vmul.f32 %v1078_v4, %v1065_v62  ;;  %v1104_v52 = vmul.f32 %v2049_v5, %v2049_v5 }
 0x762   :  { %v1069_v9 = vadd.f32 0.0036580483, %v1068_v7  ;;  %v1080_v10 = vadd.f32 0.014752088, %v1079_v8  ;;  %v2053_v12 = vmin.f32 %v1104_v52, 16.0 }
 0x764   :  { %v1081_v13 = vmul.f32 %v1080_v10, %v1065_v62  ;;  %v1070_v30 = vmul.f32 %v1069_v9, %v1065_v62  ;;  %v1106_v15 = vmul.f32 2.1237322e-06, %v2053_v12  ;;  %v1117_v18 = vmul.f32 3.8918573e-05, %v2053_v12 }
 0x765   :  { %v2057_v19 = vpop.f32.mrf.mxu1 }
 0x766   :  { %v1082_v24 = vadd.f32 0.112945676, %v1081_v13  ;;  %v1107_v29 = vadd.f32 0.00028619796, %v1106_v15  ;;  %v1118_v32 = vadd.f32 0.001143296, %v1117_v18 }
 0x767   :  { %v2060_v21 = vmul.f32 0.70710677, %v2057_v19  ;;  %v1071_v28 = vadd.f32 0.05243302, %v1070_v30 }
 0x768   :  { %v1083_v47 = vmul.f32 %v1082_v24, %v1065_v62  ;;  %v1108_v25 = vmul.f32 %v1107_v29, %v2053_v12  ;;  %v1119_v31 = vmul.f32 %v1118_v32, %v2053_v12 }
 0x769   :  { %v1144_v34 = vmul.f32 %v2060_v21, %v2060_v21  ;;  %v1072_v43 = vmul.f32 %v1071_v28, %v1065_v62 }
 0x76a   :  { %v1084_v17 = vadd.f32 0.4994258, %v1083_v47  ;;  %v1120_v6 = vadd.f32 0.014752088, %v1119_v31  ;;  %v1109_v42 = vadd.f32 0.0036580483, %v1108_v25 }
 0x76b   :  { %v2066_v40 = vmin.f32 %v1144_v34, 16.0  ;;  %v1073_v11 = vadd.f32 0.18741608, %v1072_v43 }
 0x76c   :  { %v1085_v41 = vmul.f32 %v1084_v17, %v1065_v62  ;;  %v1121_v44 = vmul.f32 %v1120_v6, %v2053_v12  ;;  %v1110_v51 = vmul.f32 %v1109_v42, %v2053_v12 }
 0x76d   :  { %v1146_v45 = vmul.f32 2.1237322e-06, %v2066_v40  ;;  %v2070_v49 = vpop.f32.mrf.mxu1  ;;  %v1157_v0 = vmul.f32 3.8918573e-05, %v2066_v40  ;;  %v1074_v20 = vmul.f32 %v1073_v11, %v1065_v62 }
 0x76e   :  { %v1086_v2 = vadd.f32 1.0, %v1085_v41  ;;  %v2074_v1 = vmul.f32 0.70710677, %v2070_v49  ;;  %v1122_v36 = vadd.f32 0.112945676, %v1121_v44 }
 0x76f   :  { %v1147_v50 = vadd.f32 0.00028619796, %v1146_v45  ;;  %v1158_v14 = vadd.f32 0.001143296, %v1157_v0  ;;  %v1111_v26 = vadd.f32 0.05243302, %v1110_v51 }
 0x770   :  { %1607 = vrcp.f32 %v1086_v2  ;;  %v1123_v37 = vmul.f32 %v1122_v36, %v2053_v12  ;;  %v1184_v53 = vmul.f32 %v2074_v1, %v2074_v1  ;;  %v1075_v30 = vadd.f32 1.1283791, %v1074_v20 }
 0x771   :  { %v1148_v48 = vmul.f32 %v1147_v50, %v2066_v40  ;;  %v1159_v22 = vmul.f32 %v1158_v14, %v2066_v40  ;;  %v1112_v52 = vmul.f32 %v1111_v26, %v2053_v12  ;;  %v1096_v15 = vand.u32 2147483647, %v1086_v2 }
 0x772   :  { %v1124_v54 = vadd.f32 0.4994258, %v1123_v37  ;;  %v2082_v55 = vmin.f32 %v1184_v53, 16.0  ;;  %v1098_v18 = vand.u32 2147483648, %v1086_v2  ;;  %vm1092_vm3 = vweird.f32 %v1086_v2 }
 0x773   :  { %v1149_v61 = vadd.f32 0.0036580483, %v1148_v48  ;;  %v1160_v16 = vadd.f32 0.014752088, %v1159_v22  ;;  %v1113_v28 = vadd.f32 0.18741608, %v1112_v52  ;;  %v1076_v39 = vmul.f32 %v1075_v30, %v2042_v60 }
 0x774   :  { %v1125_v23 = vmul.f32 %v1124_v54, %v2053_v12  ;;  %v1186_v3 = vmul.f32 2.1237322e-06, %v2082_v55  ;;  %v1197_v4 = vmul.f32 3.8918573e-05, %v2082_v55  ;;  %v1099_v17 = vor.u32 1.1754944e-38, %v1098_v18 }
 0x775   :  { %v1161_v9 = vmul.f32 %v1160_v16, %v2066_v40  ;;  %v1150_v24 = vmul.f32 %v1149_v61, %v2066_v40  ;;  %vm1097_vm5 = vcmp.eq.f32.partialorder %v1096_v15, 8.507059e+37  ;;  %v1114_v46 = vmul.f32 %v1113_v28, %v2053_v12 }
 0x776   :  { %v1608_v63 = vpop.eup %1607  ;;  %v2087_v8 = vadd.f32 1.0, %v1125_v23  ;;  %v1187_v10 = vadd.f32 0.00028619796, %v1186_v3  ;;  %v1198_v13 = vadd.f32 0.001143296, %v1197_v4  ;;  %v1056_v22 = vmul.f32 0.5, %v2039_v27 }
 0x777   :  { %v1088_v7 = vmul.f32 %v1608_v63, %v1086_v2  ;;  %v1162_v29 = vadd.f32 0.112945676, %v1161_v9  ;;  %vm1093_vm2 = vweird.f32 %v1608_v63  ;;  %v1151_v6 = vadd.f32 0.05243302, %v1150_v24 }
 0x778   :  { %1609 = vrcp.f32 %v2087_v8  ;;  %v1188_v47 = vmul.f32 %v1187_v10, %v2082_v55  ;;  %v1199_v35 = vmul.f32 %v1198_v13, %v2082_v55  ;;  %vm1094_vm4 = vmor %vm1092_vm3, %vm1093_vm2  ;;  %v1138_v51 = vand.u32 2147483648, %v2087_v8 }
 0x779   :  { %v1089_v62 = vsub.f32 1.0, %v1088_v7  ;;  %v1163_v25 = vmul.f32 %v1162_v29, %v2066_v40  ;;  %v1152_v11 = vmul.f32 %v1151_v6, %v2066_v40  ;;  %v1115_v54 = vadd.f32 1.1283791, %v1114_v46 }
 0x77a   :  { %v1200_v34 = vadd.f32 0.014752088, %v1199_v35  ;;  %v1189_v43 = vadd.f32 0.0036580483, %v1188_v47  ;;  %v1136_v12 = vand.u32 2147483647, %v2087_v8  ;;  %vm1132_vm7 = vweird.f32 %v2087_v8 }
 0x77b   :  { %v1090_v32 = vmul.f32 %v1608_v63, %v1089_v62  ;;  %v1164_v33 = vadd.f32 0.4994258, %v1163_v25  ;;  %v1139_v16 = vor.u32 1.1754944e-38, %v1138_v51  ;;  %v1153_v3 = vadd.f32 0.18741608, %v1152_v11 }
 0x77c   :  { %v1201_v44 = vmul.f32 %v1200_v34, %v2082_v55  ;;  %v1190_v14 = vmul.f32 %v1189_v43, %v2082_v55  ;;  %v1116_v7 = vmul.f32 %v1115_v54, %v2049_v5  ;;  %vm1137_vm10 = vcmp.eq.f32.partialorder %v1136_v12, 8.507059e+37 }
 0x77d   :  { %v1091_v31 = vadd.f32 %v1608_v63, %v1090_v32  ;;  %v1165_v2 = vmul.f32 %v1164_v33, %v2066_v40  ;;  %v1057_v24 = vmul.f32 0.5, %v2046_v38 }
 0x77e   :  { %v1610_v41 = vpop.eup %1609  ;;  %v1202_v50 = vadd.f32 0.112945676, %v1201_v44  ;;  %v1191_v4 = vadd.f32 0.05243302, %v1190_v14 }
 0x77f   :  { %v1095_v42 = vsel %vm1094_vm4, %v1608_v63, %v1091_v31  ;;  %v1128_v0 = vmul.f32 %v1610_v41, %v2087_v8  ;;  %v1166_v48 = vadd.f32 1.0, %v1165_v2  ;;  %vm1133_vm6 = vweird.f32 %v1610_v41 }
 0x780   :  { %v1100_v45 = vsel %vm1097_vm5, %v1099_v17, %v1095_v42  ;;  %v1203_v53 = vmul.f32 %v1202_v50, %v2082_v55  ;;  %vm1134_vm9 = vmor %vm1132_vm7, %vm1133_vm6  ;;  %v1154_v8 = vmul.f32 %v1153_v3, %v2066_v40  ;;  %v1192_v62 = vmul.f32 %v1191_v4, %v2082_v55 }
 0x781   :  { %v1101_v36 = vmul.f32 %v1100_v45, %v1076_v39  ;;  %v1129_v60 = vsub.f32 1.0, %v1128_v0  ;;  %1611 = vrcp.f32 %v1166_v48  ;;  %v1178_v47 = vand.u32 2147483648, %v1166_v48 }
 0x782   :  { %v1204_v61 = vadd.f32 0.4994258, %v1203_v53  ;;  %v1155_v32 = vadd.f32 1.1283791, %v1154_v8  ;;  %v1193_v35 = vadd.f32 0.18741608, %v1192_v62  ;;  %vm1172_vm12 = vweird.f32 %v1166_v48 }
 0x783   :  { %v1473_v37 = vclamps-f32 %v1101_v36, 1.0  ;;  %v1130_v26 = vmul.f32 %v1610_v41, %v1129_v60  ;;  %v1176_v31 = vand.u32 2147483647, %v1166_v48  ;;  %v1179_v39 = vor.u32 1.1754944e-38, %v1178_v47 }
 0x784   :  { %v1205_v9 = vmul.f32 %v1204_v61, %v2082_v55  ;;  %v1194_v17 = vmul.f32 %v1193_v35, %v2082_v55  ;;  %v1156_v38 = vmul.f32 %v1155_v32, %v2060_v21  ;;  %v1058_v2 = vmul.f32 0.5, %v2057_v19 }
 0x785   :  { %v1224_v20 = vadd.f32 1.0, %v1473_v37  ;;  %v1131_v23 = vadd.f32 %v1610_v41, %v1130_v26  ;;  %vm1177_vm14 = vcmp.eq.f32.partialorder %v1176_v31, 8.507059e+37  ;;  %v1059_v53 = vmul.f32 0.5, %v2070_v49 }
 0x786   :  { %v1206_v13 = vadd.f32 1.0, %v1205_v9  ;;  %v1195_v44 = vadd.f32 1.1283791, %v1194_v17  ;;  %vm1388_vm4 = vcmask 785408  }
 0x787   :  { %v1228_v63 = vmul.f32 %v1224_v20, %v1056_v22  ;;  %v1135_v52 = vsel %vm1134_vm9, %v1610_v41, %v1131_v23  ;;  %v1612_v30 = vpop.eup %1611  ;;  %v1279_v20 = vpop.permute.xlu1 %1278 }
 0x788   :  { %v1140_v10 = vsel %vm1137_vm10, %v1139_v16, %v1135_v52  ;;  %v1168_v18 = vmul.f32 %v1612_v30, %v1166_v48  ;;  %1613 = vrcp.f32 %v1206_v13  ;;  %vm1173_vm11 = vweird.f32 %v1612_v30  ;;  %v1303_v16 = vpop.permute.xlu2 %1302 }
 0x789   :  { %1477 = vmatmul.msk.f32.vlgmr.msrb.gmra.mxu3 %vm1232_vm8, %v1228_v63  ;;  %v1141_v27 = vmul.f32 %v1140_v10, %v1116_v7  ;;  %vm1174_vm13 = vmor %vm1172_vm12, %vm1173_vm11  ;;  %v1218_v45 = vand.u32 2147483648, %v1206_v13  ;;  %v1216_v36 = vand.u32 2147483647, %v1206_v13  ;;  %vm1212_vm1 = vweird.f32 %v1206_v13 }
 0x78a   :  { %v1169_v29 = vsub.f32 1.0, %v1168_v18  ;;  %v1196_v51 = vmul.f32 %v1195_v44, %v2074_v1 }
 0x78b   :  { %v1474_v15 = vclamps-f32 %v1141_v27, 1.0  ;;  %v1219_v55 = vor.u32 1.1754944e-38, %v1218_v45  ;;  %vm1217_vm3 = vcmp.eq.f32.partialorder %v1216_v36, 8.507059e+37 }
 0x78c   :  { %v1170_v25 = vmul.f32 %v1612_v30, %v1169_v29 }
 0x78d   :  { %v1225_v5 = vadd.f32 1.0, %v1474_v15 }
 0x78e   :  { %v1171_v34 = vadd.f32 %v1612_v30, %v1170_v25  ;;  %v1614_v40 = vpop.eup %1613 }
 0x78f   :  { %v1229_v28 = vmul.f32 %v1225_v5, %v1057_v24  ;;  %v1208_v33 = vmul.f32 %v1614_v40, %v1206_v13  ;;  %vm1213_vm15 = vweird.f32 %v1614_v40  ;;  %v1351_v3 = vpop.permute.xlu1 %1350 }
 0x790   :  { %v1175_v6 = vsel %vm1174_vm13, %v1612_v30, %v1171_v34  ;;  %vm1214_vm2 = vmor %vm1212_vm1, %vm1213_vm15 }
 0x791   :  { %1478 = vmatmul.msk.f32.gmra.mxu3 %vm1232_vm8, %v1229_v28  ;;  %v1180_v41 = vsel %vm1177_vm14, %v1179_v39, %v1175_v6  ;;  %v1209_v43 = vsub.f32 1.0, %v1208_v33 }
 0x792   :  { %v1181_v42 = vmul.f32 %v1180_v41, %v1156_v38 }
 0x793   :  { %v1210_v0 = vmul.f32 %v1614_v40, %v1209_v43 }
 0x794   :  { %v1475_v46 = vclamps-f32 %v1181_v42, 1.0 }
 0x795   :  { %v1211_v60 = vadd.f32 %v1614_v40, %v1210_v0 }
 0x796   :  { %v1226_v50 = vadd.f32 1.0, %v1475_v46 }
 0x797   :  { %v1215_v11 = vsel %vm1214_vm2, %v1614_v40, %v1211_v60 }
 0x798   :  { %v1230_v21 = vmul.f32 %v1226_v50, %v1058_v2  ;;  %v1220_v37 = vsel %vm1217_vm3, %v1219_v55, %v1215_v11 }
 0x799   :  { %v1221_v48 = vmul.f32 %v1220_v37, %v1196_v51 }
 0x79a   :  { %1479 = vmatmul.msk.f32.gmra.mxu3 %vm1232_vm8, %v1230_v21 }
 0x79b   :  { %v1476_v14 = vclamps-f32 %v1221_v48, 1.0 }
 0x79d   :  { %v1227_v54 = vadd.f32 1.0, %v1476_v14 }
 0x79f   :  { %v1231_v26 = vmul.f32 %v1227_v54, %v1059_v53 }
 0x7a2   :  { %1480 = vmatmul.msk.f32.gmra.mxu3 %vm1232_vm8, %v1231_v26 }
 0x80c   :  { %v1262_v19 = vpop.f32.mrf.mxu3 }
 0x80d   :  { %v1274_v49 = vadd.f32 %v1262_v19, %v2023_v56 }
 0x814   :  { %v1265_v12 = vpop.f32.mrf.mxu3 }
 0x815   :  { %v1275_v63 = vadd.f32 %v1265_v12, %v2027_v57  ;;  %v1327_v57 = vpop.permute.xlu0 %1326 }
 0x81d   :  { %v1268_v22 = vpop.f32.mrf.mxu3 }
 0x81e   :  { %v1276_v61 = vadd.f32 %v1268_v22, %v2031_v58 }
 0x825   :  { %v1271_v23 = vpop.f32.mrf.mxu3 }
 0x826   :  { %v1277_v1 = vadd.f32 %v1271_v23, %v2035_v59 }
 0x828   :  { %1294 = vmatpush.msra.mxu0 %v1277_v1  ;;  %1318 = vmatpush.msra.mxu2 %v1277_v1 }
 0x829   :  { %1366 = vmatpush.msra.mxu1 %v1277_v1 }
 0x82a   :  { %1295 = vmatpush.msra.mxu0 %v1276_v61  ;;  %1319 = vmatpush.msra.mxu2 %v1276_v61 }
 0x82b   :  { %1367 = vmatpush.msra.mxu1 %v1276_v61 }
 0x82c   :  { %1296 = vmatpush.msra.mxu0 %v1275_v63  ;;  %1320 = vmatpush.msra.mxu2 %v1275_v63 }
 0x82d   :  { %1368 = vmatpush.msra.mxu1 %v1275_v63 }
 0x82e   :  { %1297 = vmatpush.msra.mxu0 %v1274_v49  ;;  %1321 = vmatpush.msra.mxu2 %v1274_v49 }
 0x82f   :  { %1369 = vmatpush.msra.mxu1 %v1274_v49  ;;  %1481 = vmatmul.msk.f32.vlgmr.msra.gmra.mxu0 %vm70_vm0, %v1279_v20 }
 0x830   :  { %1482 = vmatmul.msk.f32.vlgmr.msra.gmra.mxu2 %vm70_vm0, %v1303_v16  ;;  %1342 = vmatpush.msrb.mxu0 %v1277_v1 }
 0x831   :  { %1484 = vmatmul.msk.f32.vlgmr.msra.gmra.mxu1 %vm70_vm0, %v1351_v3 }
 0x832   :  { %1343 = vmatpush.msrb.mxu0 %v1276_v61 }
 0x834   :  { %1344 = vmatpush.msrb.mxu0 %v1275_v63 }
 0x836   :  { %1345 = vmatpush.msrb.mxu0 %v1274_v49 }
 0x837   :  { %1483 = vmatmul.msk.f32.vlgmr.msrb.gmra.mxu0 %vm70_vm0, %v1327_v57 }
 0x8ac   :  { %v1299_v56 = vpop.f32.mrf.mxu0 }
 0x8ae   :  { %v1371_v58 = vpop.f32.mrf.mxu1 }
 0x8af   :  { %1383 = vrot.lane.b32.xlu1 %v1371_v58, %s1675_s0 }
 0x8b3   :  { %v1323_v59 = vpop.f32.mrf.mxu2 }
 0x8b4   :  { %1375 = vrot.lane.b32.xlu2 %v1323_v59, %s1678_s22  ;;  %v1347_v4 = vpop.f32.mrf.mxu0 }
 0x8b5   :  { %1379 = vrot.lane.b32.xlu0 %v1347_v4, %s1676_s1 }
 0x90e   :  { %v1376_v7 = vpop.permute.xlu2 %1375 }
 0x90f   :  { %v1386_v9 = vsel %vm70_vm0, %v1299_v56, %v1376_v7 }
 0x921   :  { %v1384_v52 = vpop.permute.xlu1 %1383 }
 0x927   :  { %v1380_v10 = vpop.permute.xlu0 %1379 }
 0x928   :  { %v1387_v27 = vsel %vm1232_vm8, %v1386_v9, %v1380_v10 }
 0x929   :  { %v1389_v13 = vsel %vm1388_vm4, %v1387_v27, %v1384_v52 }
 0x92a   :  { %1390 = vst [vmem:[%s2140_s2] sm:$0xff] %v1389_v13 }
 0x92b   :  { %1395 = vsyncpa [#allocation3], 1 }
 0x92c   :  { %1396 = vsyncpa [#allocation5], 1 }

</bundles_post_ra>
